<compile_context>
chip_gen: v6e
topology: v6e:2x2x1
jax: 0.10.0
libtpu: 0.0.40
codegen_flags: <defaults>
</compile_context>

<pallas_src>
import functools

import jax
import jax.numpy as jnp
import numpy as np
from jax.experimental import pallas as pl
from jax.experimental.pallas import tpu as pltpu

LANE = 128  # TPU lane width: channel dims are padded to a multiple of this.


def _round_up(x, m):
    return (x + m - 1) // m * m


def _largest_divisor_leq(n, cap):
    for t in range(min(n, cap), 0, -1):
        if n % t == 0:
            return t
    return 1


# ----------------------------------------------------------------------------
# SWAT helper semantics (re-implemented in JAX; glue, not the hot path)
# ----------------------------------------------------------------------------
def drop_threshold(x, threshold):
    """Zero out elements whose magnitude is below `threshold`."""
    return jnp.where(jnp.abs(x) >= threshold, x, jnp.zeros_like(x))


def drop_nhwc_send_th(x, select_percentage):
    """Keep the top `select_percentage` fraction of elements by magnitude.

    Returns (sparsified_x, threshold) where threshold is the smallest kept |x|.
    Operates on the ORIGINAL (un-padded) tensor so lane padding never affects it.
    """
    flat = jnp.abs(x).reshape(-1)
    n = flat.shape[0]
    k = max(int(select_percentage * n), 1)
    topk_vals = jax.lax.top_k(flat, k)[0]
    threshold = topk_vals[-1]
    return jnp.where(jnp.abs(x) >= threshold, x, jnp.zeros_like(x)), threshold


# ----------------------------------------------------------------------------
# Pallas conv2d kernel (stride=1, groups=1; padding/dilation handled statically)
# ----------------------------------------------------------------------------
def _conv_kernel(x_ref, w_ref, o_ref, cols_ref, *,
                 KH, KW, CIN_P, TH, WO, TCO, DH, DW):
    # x_ref   : (1, Hp, Wp, CIN_P)     padded NHWC image (bf16), resident per batch n
    # w_ref   : (KH*KW*CIN_P, TCO)     im2col-ordered weight tile (bf16)
    # o_ref   : (1, TH, WO, TCO)       output row tile
    # cols_ref: (TH*WO, KH*KW*CIN_P)   im2col scratch (bf16), rebuilt once per (n, i)
    i = pl.program_id(1)    # output row tile index
    co = pl.program_id(2)   # Cout tile index (innermost, "arbitrary")

    @pl.when(co == 0)
    def _build_im2col():
        row0 = i * TH
        if TH % 8 == 0:
            row0 = pl.multiple_of(row0, 8)
        for kh in range(KH):                                   # static 3x3 unroll
            rows = x_ref[0, pl.ds(row0 + kh * DH, TH), :, :]   # (TH, Wp, CIN_P)
            for kw in range(KW):
                tap = kh * KW + kw
                patch = rows[:, kw * DW:kw * DW + WO, :]       # (TH, WO, CIN_P)
                # lane-aligned column offset (multiple of 128) -> cheap store
                cols_ref[:, tap * CIN_P:(tap + 1) * CIN_P] = (
                    patch.reshape(TH * WO, CIN_P))

    # One large-K matmul per tile: (TH*WO, KH*KW*CIN_P) x (KH*KW*CIN_P, TCO),
    # f32 MXU accumulation.  No separate accumulator needed.
    acc = jnp.dot(cols_ref[...], w_ref[...], preferred_element_type=jnp.float32)
    o_ref[0] = acc.reshape(TH, WO, TCO).astype(o_ref.dtype)


def pallas_conv2d_nchw(x_nchw, w_oihw, *, padding=1, dilation=1,
                       compute_dtype=jnp.bfloat16):
    """conv2d with stride=1, groups=1, bias=None. NCHW in / NCHW out."""
    N, Cin, H, W = x_nchw.shape
    Cout, Cin_w, KH, KW = w_oihw.shape
    assert Cin == Cin_w
    # TODO(synk): stride != 1, groups != 1 and bias are not implemented (module defaults used).

    ph = pw = padding
    dh = dw = dilation
    Hp, Wp = H + 2 * ph, W + 2 * pw
    Ho = Hp - dh * (KH - 1)
    Wo = Wp - dw * (KW - 1)

    Cin_p = _round_up(Cin, LANE)
    Cout_p = _round_up(Cout, LANE)

    # NCHW -> NHWC, spatial halo pad + channel pad to lane width, cast to bf16.
    # Chained so XLA fuses transpose/pad/cast into one pass over the activation.
    x = jnp.transpose(x_nchw, (0, 2, 3, 1))
    x = jnp.pad(x, ((0, 0), (ph, ph), (pw, pw), (0, Cin_p - Cin)))
    x = x.astype(compute_dtype)

    # OIHW -> HWIO, channel-pad, flatten to im2col order (KH*KW*Cin_p, Cout_p).
    w = jnp.transpose(w_oihw, (2, 3, 1, 0))
    w = jnp.pad(w, ((0, 0), (0, 0), (0, Cin_p - Cin), (0, Cout_p - Cout)))
    w = w.reshape(KH * KW * Cin_p, Cout_p).astype(compute_dtype)

    # Row tiling bounds VMEM independent of image height and gives the 2 TCs on
    # v7x multiple parallel steps; Cout tiled to 128/256 lanes (lane-dense output).
    TH = _largest_divisor_leq(Ho, 8)
    TCo = 256 if Cout_p % 256 == 0 else 128
    nH = Ho // TH
    nCo = Cout_p // TCo
    Kdim = KH * KW * Cin_p

    # TODO(synk): for images too tall to keep the whole padded NHWC slab in VMEM,
    # switch the input to manual halo-row DMA (TH + dh*(KH-1) rows per tile).
    kernel = functools.partial(
        _conv_kernel, KH=KH, KW=KW, CIN_P=Cin_p,
        TH=TH, WO=Wo, TCO=TCo, DH=dh, DW=dw)

    out_nhwc = pl.pallas_call(
        kernel,
        out_shape=jax.ShapeDtypeStruct((N, Ho, Wo, Cout_p), x_nchw.dtype),
        grid_spec=pltpu.PrefetchScalarGridSpec(
            num_scalar_prefetch=0,
            grid=(N, nH, nCo),
            in_specs=[
                pl.BlockSpec((1, Hp, Wp, Cin_p), lambda n, i, co: (n, 0, 0, 0)),
                pl.BlockSpec((Kdim, TCo), lambda n, i, co: (0, co)),
            ],
            out_specs=pl.BlockSpec((1, TH, Wo, TCo), lambda n, i, co: (n, i, 0, co)),
            scratch_shapes=[pltpu.VMEM((TH * Wo, Kdim), compute_dtype)],
        ),
        compiler_params=pltpu.CompilerParams(
            dimension_semantics=("parallel", "parallel", "arbitrary"),
            # Budgeted for v7x's 64 MiB physical VMEM; well above v5e's 16 MiB default.
            vmem_limit_bytes=48 * 1024 * 1024,
        ),
    )(x, w)

    out_nhwc = out_nhwc[..., :Cout]              # strip channel padding
    # TODO(synk): keep the surrounding model in NHWC to avoid this HBM relayout.
    return jnp.transpose(out_nhwc, (0, 3, 1, 2))


# ----------------------------------------------------------------------------
# SWATConv2D forward (unstructured pruning, bias=False — module defaults)
# ----------------------------------------------------------------------------
def swat_conv2d_forward(x_nchw, weight_oihw, *, alpha, sparsity,
                        padding=1, dilation=1, compute_dtype=jnp.bfloat16):
    # --- weight state updates from SWATConv2D.forward (on un-padded tensors) ---
    w = drop_threshold(weight_oihw, sparsity)                   # sparsity used as abs threshold
    w, wt_threshold = drop_nhwc_send_th(w, 1.0 - sparsity)      # wt_threshold < 0 on first call
    if alpha == 1.0:
        w_eff = w
    else:
        w_eff = jnp.sign(w) * jnp.power(jnp.abs(w), alpha)      # powerprop

    # --- swat_conv2d_unstructured.forward: dense conv with effective weight ---
    output = pallas_conv2d_nchw(x_nchw, w_eff, padding=padding, dilation=dilation,
                                compute_dtype=compute_dtype)

    # Input sparsification only feeds ctx.save_for_backward / in_threshold state.
    _, in_threshold = drop_nhwc_send_th(x_nchw, 1.0 - sparsity)

    aux = {"w_eff": w_eff, "wt_threshold": wt_threshold, "in_threshold": in_threshold}
    return output, aux


if __name__ == "__main__":
    key = jax.random.PRNGKey(0)
    k_x, k_w = jax.random.split(key)

    N, Cin, H, W = 2, 4, 16, 16
    Cout, K = 8, 3
    alpha, sparsity = 1.5, 0.3

    x = jax.random.normal(k_x, (N, Cin, H, W), dtype=jnp.float32)
    weight = jax.random.normal(k_w, (Cout, Cin, K, K), dtype=jnp.float32) * 0.5

    out, aux = swat_conv2d_forward(x, weight, alpha=alpha, sparsity=sparsity,
                                   padding=1, dilation=1)
    out = jax.block_until_ready(out)

    # sanity check vs XLA conv with the same bf16-rounded operands (f32 accumulation)
    x_bf = x.astype(jnp.bfloat16).astype(jnp.float32)
    w_bf = aux["w_eff"].astype(jnp.bfloat16).astype(jnp.float32)
    ref = jax.lax.conv_general_dilated(
        x_bf, w_bf, window_strides=(1, 1), padding=((1, 1), (1, 1)),
        dimension_numbers=("NCHW", "OIHW", "NCHW"))
    np.testing.assert_allclose(np.asarray(out), np.asarray(ref), rtol=1e-2, atol=1e-2)

    assert out.shape == (N, Cout, H, W)
    print("KERNEL_OK")
</pallas_src>

<mosaic_0001>
module attributes {stable_mosaic.version = 11 : i64} {
  func.func @_conv_kernel(%arg0: i32, %arg1: i32, %arg2: i32, %arg3: memref<1x18x18x128xbf16, #tpu.memory_space<vmem>>, %arg4: memref<1152x128xbf16, #tpu.memory_space<vmem>>, %arg5: memref<1x8x16x128xf32, #tpu.memory_space<vmem>>, %arg6: memref<128x1152xbf16, #tpu.memory_space<vmem>>) attributes {dimension_semantics = [#tpu.dimension_semantics<parallel>, #tpu.dimension_semantics<parallel>, #tpu.dimension_semantics<arbitrary>], iteration_bounds = array<i64: 2, 2, 1>, scalar_prefetch = 0 : i64, scratch_operands = 1 : i64, tpu.core_type = #tpu.core_type<tc>, window_params = [{transform_indices = @transform_0, window_bounds = array<i64: 1, 18, 18, 128>}, {transform_indices = @transform_1, window_bounds = array<i64: 1152, 128>}, {transform_indices = @transform_2, window_bounds = array<i64: 1, 8, 16, 128>}]} {
    %c0_i32 = arith.constant 0 : i32
    %0 = arith.cmpi eq, %arg2, %c0_i32 : i32
    %1 = arith.extui %0 : i1 to i32
    %c0_i32_0 = arith.constant 0 : i32
    %2 = arith.cmpi ne, %1, %c0_i32_0 : i32
    scf.if %2 {
      %c8_i32 = arith.constant 8 : i32
      %10 = arith.muli %arg1, %c8_i32 : i32
      %11 = tpu.assume_multiple %10, 8 : i32
      %c0_i32_8 = arith.constant 0 : i32
      %12 = arith.addi %11, %c0_i32_8 : i32
      %c0_9 = arith.constant 0 : index
      %13 = arith.index_cast %12 : i32 to index
      %c0_10 = arith.constant 0 : index
      %c0_11 = arith.constant 0 : index
      %14 = vector.load %arg3[%c0_9, %13, %c0_10, %c0_11] : memref<1x18x18x128xbf16, #tpu.memory_space<vmem>>, vector<1x8x18x128xbf16>
      %15 = vector.shape_cast %14 : vector<1x8x18x128xbf16> to vector<8x18x128xbf16>
      %16 = vector.extract_strided_slice %15 {offsets = [0, 0, 0], sizes = [8, 16, 128], strides = [1, 1, 1]} : vector<8x18x128xbf16> to vector<8x16x128xbf16>
      %17 = vector.shape_cast %16 : vector<8x16x128xbf16> to vector<128x128xbf16>
      %c0_12 = arith.constant 0 : index
      %c0_13 = arith.constant 0 : index
      %18 = vector.load %arg6[%c0_12, %c0_13] : memref<128x1152xbf16, #tpu.memory_space<vmem>>, vector<128x128xbf16>
      tpu.vector_store %arg6[%c0_12, %c0_13], %17 {strides = array<i32>} : memref<128x1152xbf16, #tpu.memory_space<vmem>>, vector<128x128xbf16>,
      %19 = vector.extract_strided_slice %15 {offsets = [0, 1, 0], sizes = [8, 16, 128], strides = [1, 1, 1]} : vector<8x18x128xbf16> to vector<8x16x128xbf16>
      %20 = vector.shape_cast %19 : vector<8x16x128xbf16> to vector<128x128xbf16>
      %c0_14 = arith.constant 0 : index
      %c128 = arith.constant 128 : index
      %21 = vector.load %arg6[%c0_14, %c128] : memref<128x1152xbf16, #tpu.memory_space<vmem>>, vector<128x128xbf16>
      tpu.vector_store %arg6[%c0_14, %c128], %20 {strides = array<i32>} : memref<128x1152xbf16, #tpu.memory_space<vmem>>, vector<128x128xbf16>,
      %22 = vector.extract_strided_slice %15 {offsets = [0, 2, 0], sizes = [8, 16, 128], strides = [1, 1, 1]} : vector<8x18x128xbf16> to vector<8x16x128xbf16>
      %23 = vector.shape_cast %22 : vector<8x16x128xbf16> to vector<128x128xbf16>
      %c0_15 = arith.constant 0 : index
      %c256 = arith.constant 256 : index
      %24 = vector.load %arg6[%c0_15, %c256] : memref<128x1152xbf16, #tpu.memory_space<vmem>>, vector<128x128xbf16>
      tpu.vector_store %arg6[%c0_15, %c256], %23 {strides = array<i32>} : memref<128x1152xbf16, #tpu.memory_space<vmem>>, vector<128x128xbf16>,
      %c1_i32 = arith.constant 1 : i32
      %25 = arith.addi %11, %c1_i32 : i32
      %c0_16 = arith.constant 0 : index
      %26 = arith.index_cast %25 : i32 to index
      %c0_17 = arith.constant 0 : index
      %c0_18 = arith.constant 0 : index
      %27 = vector.load %arg3[%c0_16, %26, %c0_17, %c0_18] : memref<1x18x18x128xbf16, #tpu.memory_space<vmem>>, vector<1x8x18x128xbf16>
      %28 = vector.shape_cast %27 : vector<1x8x18x128xbf16> to vector<8x18x128xbf16>
      %29 = vector.extract_strided_slice %28 {offsets = [0, 0, 0], sizes = [8, 16, 128], strides = [1, 1, 1]} : vector<8x18x128xbf16> to vector<8x16x128xbf16>
      %30 = vector.shape_cast %29 : vector<8x16x128xbf16> to vector<128x128xbf16>
      %c0_19 = arith.constant 0 : index
      %c384 = arith.constant 384 : index
      %31 = vector.load %arg6[%c0_19, %c384] : memref<128x1152xbf16, #tpu.memory_space<vmem>>, vector<128x128xbf16>
      tpu.vector_store %arg6[%c0_19, %c384], %30 {strides = array<i32>} : memref<128x1152xbf16, #tpu.memory_space<vmem>>, vector<128x128xbf16>,
      %32 = vector.extract_strided_slice %28 {offsets = [0, 1, 0], sizes = [8, 16, 128], strides = [1, 1, 1]} : vector<8x18x128xbf16> to vector<8x16x128xbf16>
      %33 = vector.shape_cast %32 : vector<8x16x128xbf16> to vector<128x128xbf16>
      %c0_20 = arith.constant 0 : index
      %c512 = arith.constant 512 : index
      %34 = vector.load %arg6[%c0_20, %c512] : memref<128x1152xbf16, #tpu.memory_space<vmem>>, vector<128x128xbf16>
      tpu.vector_store %arg6[%c0_20, %c512], %33 {strides = array<i32>} : memref<128x1152xbf16, #tpu.memory_space<vmem>>, vector<128x128xbf16>,
      %35 = vector.extract_strided_slice %28 {offsets = [0, 2, 0], sizes = [8, 16, 128], strides = [1, 1, 1]} : vector<8x18x128xbf16> to vector<8x16x128xbf16>
      %36 = vector.shape_cast %35 : vector<8x16x128xbf16> to vector<128x128xbf16>
      %c0_21 = arith.constant 0 : index
      %c640 = arith.constant 640 : index
      %37 = vector.load %arg6[%c0_21, %c640] : memref<128x1152xbf16, #tpu.memory_space<vmem>>, vector<128x128xbf16>
      tpu.vector_store %arg6[%c0_21, %c640], %36 {strides = array<i32>} : memref<128x1152xbf16, #tpu.memory_space<vmem>>, vector<128x128xbf16>,
      %c2_i32 = arith.constant 2 : i32
      %38 = arith.addi %11, %c2_i32 : i32
      %c0_22 = arith.constant 0 : index
      %39 = arith.index_cast %38 : i32 to index
      %c0_23 = arith.constant 0 : index
      %c0_24 = arith.constant 0 : index
      %40 = vector.load %arg3[%c0_22, %39, %c0_23, %c0_24] : memref<1x18x18x128xbf16, #tpu.memory_space<vmem>>, vector<1x8x18x128xbf16>
      %41 = vector.shape_cast %40 : vector<1x8x18x128xbf16> to vector<8x18x128xbf16>
      %42 = vector.extract_strided_slice %41 {offsets = [0, 0, 0], sizes = [8, 16, 128], strides = [1, 1, 1]} : vector<8x18x128xbf16> to vector<8x16x128xbf16>
      %43 = vector.shape_cast %42 : vector<8x16x128xbf16> to vector<128x128xbf16>
      %c0_25 = arith.constant 0 : index
      %c768 = arith.constant 768 : index
      %44 = vector.load %arg6[%c0_25, %c768] : memref<128x1152xbf16, #tpu.memory_space<vmem>>, vector<128x128xbf16>
      tpu.vector_store %arg6[%c0_25, %c768], %43 {strides = array<i32>} : memref<128x1152xbf16, #tpu.memory_space<vmem>>, vector<128x128xbf16>,
      %45 = vector.extract_strided_slice %41 {offsets = [0, 1, 0], sizes = [8, 16, 128], strides = [1, 1, 1]} : vector<8x18x128xbf16> to vector<8x16x128xbf16>
      %46 = vector.shape_cast %45 : vector<8x16x128xbf16> to vector<128x128xbf16>
      %c0_26 = arith.constant 0 : index
      %c896 = arith.constant 896 : index
      %47 = vector.load %arg6[%c0_26, %c896] : memref<128x1152xbf16, #tpu.memory_space<vmem>>, vector<128x128xbf16>
      tpu.vector_store %arg6[%c0_26, %c896], %46 {strides = array<i32>} : memref<128x1152xbf16, #tpu.memory_space<vmem>>, vector<128x128xbf16>,
      %48 = vector.extract_strided_slice %41 {offsets = [0, 2, 0], sizes = [8, 16, 128], strides = [1, 1, 1]} : vector<8x18x128xbf16> to vector<8x16x128xbf16>
      %49 = vector.shape_cast %48 : vector<8x16x128xbf16> to vector<128x128xbf16>
      %c0_27 = arith.constant 0 : index
      %c1024 = arith.constant 1024 : index
      %50 = vector.load %arg6[%c0_27, %c1024] : memref<128x1152xbf16, #tpu.memory_space<vmem>>, vector<128x128xbf16>
      tpu.vector_store %arg6[%c0_27, %c1024], %49 {strides = array<i32>} : memref<128x1152xbf16, #tpu.memory_space<vmem>>, vector<128x128xbf16>,
    } else {
    }
    %c0 = arith.constant 0 : index
    %c0_1 = arith.constant 0 : index
    %3 = vector.load %arg6[%c0, %c0_1] : memref<128x1152xbf16, #tpu.memory_space<vmem>>, vector<128x1152xbf16>
    %c0_2 = arith.constant 0 : index
    %c0_3 = arith.constant 0 : index
    %4 = vector.load %arg4[%c0_2, %c0_3] : memref<1152x128xbf16, #tpu.memory_space<vmem>>, vector<1152x128xbf16>
    %cst = arith.constant dense<0.000000e+00> : vector<128x128xf32>
    %5 = tpu.matmul %3, %4, %cst {dimension_numbers = #tpu.dot_dimension_numbers<[1], [0], [0], [1], [0, 0, 1, 1], [], []>} : vector<128x1152xbf16>, vector<1152x128xbf16>, vector<128x128xf32> -> vector<128x128xf32>
    %6 = vector.shape_cast %5 : vector<128x128xf32> to vector<8x16x128xf32>
    %c0_4 = arith.constant 0 : index
    %c0_5 = arith.constant 0 : index
    %c0_6 = arith.constant 0 : index
    %c0_7 = arith.constant 0 : index
    %7 = vector.load %arg5[%c0_4, %c0_5, %c0_6, %c0_7] : memref<1x8x16x128xf32, #tpu.memory_space<vmem>>, vector<1x8x16x128xf32>
    %8 = vector.shape_cast %7 : vector<1x8x16x128xf32> to vector<8x16x128xf32>
    %9 = vector.shape_cast %6 : vector<8x16x128xf32> to vector<1x8x16x128xf32>
    tpu.vector_store %arg5[%c0_4, %c0_5, %c0_6, %c0_7], %9 {strides = array<i32>} : memref<1x8x16x128xf32, #tpu.memory_space<vmem>>, vector<1x8x16x128xf32>,
    return
  }
  func.func @transform_0(%arg0: i32, %arg1: i32, %arg2: i32) -> (i32, i32, i32, i32) {
    %c0_i32 = arith.constant 0 : i32
    %c0_i32_0 = arith.constant 0 : i32
    %c0_i32_1 = arith.constant 0 : i32
    %c0_i32_2 = arith.constant 0 : i32
    return %arg0, %c0_i32, %c0_i32_0, %c0_i32_1 : i32, i32, i32, i32
  }
  func.func @transform_1(%arg0: i32, %arg1: i32, %arg2: i32) -> (i32, i32) {
    %c0_i32 = arith.constant 0 : i32
    %c0_i32_0 = arith.constant 0 : i32
    return %c0_i32, %arg2 : i32, i32
  }
  func.func @transform_2(%arg0: i32, %arg1: i32, %arg2: i32) -> (i32, i32, i32, i32) {
    %c0_i32 = arith.constant 0 : i32
    %c0_i32_0 = arith.constant 0 : i32
    return %arg0, %arg1, %c0_i32, %arg2 : i32, i32, i32, i32
  }
}

</mosaic_0001>

<bundles_post_ra>
// kernel: tpu_custom_call.1
= control target key start
LH: loop header
LB: loop body
LE: loop exit
PB: predicated region body
PF: predicated region fallthrough
CT: control target
= control target key end

     0   :  { %7 = vsyncpa [#allocation4], 0  ;;  %s4998_s0 = inlined_call_operand.vmem [shape: bf16[2,18,18,128], index: 0, kind: input, shape index: {}]   ;;  %s4999_s1 = inlined_call_operand.vmem [shape: bf16[1152,128], index: 1, kind: input, shape index: {}]   ;;  %s5000_s2 = inlined_call_operand.hbm [shape: f32[2,16,16,128], index: 2, kind: output, shape index: {}]  }
   0x1   :  { %9 = vsyncpa [#allocation4 + $0x1], 0  ;;  %s3890_s9 = smov 0   ;;  %s3892_s10 = smov 0  }
   0x2   :  { %s3894_s11 = smov 0   ;;  %s3896_s12 = smov 0  }
   0x3   :  { %s3898_s13 = smov 0   ;;  %s3900_s14 = smov 0  }
   0x4   :  { %s3902_s15 = smov 0   ;;  %s3904_s16 = smov 0  }
   0x5 LB: > { %s2982_s17 = sadd.s32 4294967295, %s3870_s16   ;;  %s2983_s18 = sadd.s32 4294967294, %s3870_s16   ;;  %s3870_s16 = sphi %s3904_s16, %s15_s16   ;;  %s3866_s15 = sphi %s3902_s15, %s5051_s15   ;;  %s3862_s14 = sphi %s3900_s14, %s5050_s14   ;;  %s3858_s13 = sphi %s3898_s13, %s5049_s13   ;;  %s3854_s12 = sphi %s3896_s12, %s5048_s12   ;;  %s3850_s11 = sphi %s3894_s11, %s5047_s11   ;;  %s3846_s10 = sphi %s3892_s10, %s5046_s10   ;;  %s3842_s9 = sphi %s3890_s9, %s5045_s9  }
   0x6   : > { %s30_s19 = sadd.s32 1, %s3862_s14  ;;  %s34_s20 = sadd.s32 1, %s3866_s15 }
   0x7   : > { %p32_p0 = scmp.ge.s32.totalorder %s30_s19, 2  ;;  %p107_p1 = scmp.ne.s32.totalorder %s3850_s11, %s3846_s10 }
   0x8   : > { %p108_p2 = scmp.eq.s32.totalorder %s2982_s17, 3  ;;  %p113_p5 = scmp.ne.s32.totalorder %s3846_s10, %s3842_s9 }
   0x9   : > { %s5053_s19 = smov (%p32_p0, %s30_s19), 0  ;;  %s5055_s20 = smov (!%p32_p0, %s34_s20), %s3866_s15 }
   0xa   : > { %s91_s21 = ssub.s32 %s3862_s14, %s5053_s19  ;;  %p3941_p3 = por %p108_p2, %p107_p1 }
   0xb   : > { %p36_p4 = scmp.ge.s32.totalorder %s5055_s20, 2  ;;  %p114_p6 = scmp.eq.s32.totalorder %s2983_s18, 3 }
   0xc   : > { %p2987_p7 = scmp.ge.s32.totalorder %s3870_s16, 1  ;;  %p147_p9 = scmp.lt.s32.totalorder %s3870_s16, 5 }
   0xd   : > { %s5057_s20 = smov (%p36_p4, %s5055_s20), 0  ;;  %p3950_p8 = por %p114_p6, %p113_p5 }
   0xe   : > { %s90_s24 = ssub.s32 %s3866_s15, %s5057_s20  ;;  %s97_s25 = sadd.s32 1, %s3850_s11 }
   0xf   : > { %s92_s26 = sor.u32 %s91_s21, %s90_s24  ;;  %p148_p10 = pnand %p2987_p7, %p147_p9 }
  0x10   : > { %p95_p11 = scmp.eq.s32.totalorder %s92_s26, 0 }
  0x11   : > { %151 = sbr.rel (%p148_p10) target bundleno = 436 (0x1b4), region = 28 }
  0x12   : > { %s3959_s27 = scalar_select %p95_p11, %s3850_s11, %s97_s25  }
  0x16   : > { %v3616_v0 = vld [vmem:[%s4999_s1 + $0x78] sm:$0xff]   ;;  %v3620_v4 = vld [vmem:[%s4999_s1 + $0x70] sm:$0xff]   ;;  %v3624_v8 = vld [vmem:[%s4999_s1 + $0x68] sm:$0xff]   ;;  %p173_p12 = scmp.lt.s32.totalorder %s3858_s13, 1  ;;  %s3220_s18 = smul.u32 96, %s3854_s12  ;;  %vm483_vm0 = vcmask 1042432  }
  0x17   : > { %v3617_v1 = vld [vmem:[%s4999_s1 + $0xf8] sm:$0xff]   ;;  %3222 = vmatprep.subr.bf16.mxu0 %v3616_v0  ;;  %v3621_v5 = vld [vmem:[%s4999_s1 + $0xf0] sm:$0xff]   ;;  %v3625_v9 = vld [vmem:[%s4999_s1 + $0xe8] sm:$0xff]   ;;  %vm484_vm1 = vcmask 1046532   ;;  %vm232_vm2 = vsmask.f32 3328 }
  0x18   : > { %v3618_v2 = vld [vmem:[%s4999_s1 + $0x38] sm:$0xff]   ;;  %3286 = vmatprep.subr.bf16.mxu1 %v3617_v1  ;;  %v3622_v6 = vld [vmem:[%s4999_s1 + $0x30] sm:$0xff]   ;;  %v3626_v10 = vld [vmem:[%s4999_s1 + $0x28] sm:$0xff]   ;;  %s174_s8 = scalar_select %p173_p12, %s3858_s13, 1  ;;  %vm233_vm3 = vsmask.f32 7440 }
  0x19   : > { %v3619_v3 = vld [vmem:[%s4999_s1 + $0xb8] sm:$0xff]   ;;  %3223 = vmatpush3.bf16.msra.mxu0 %v3618_v2  ;;  %v3623_v7 = vld [vmem:[%s4999_s1 + $0xb0] sm:$0xff]   ;;  %v3627_v11 = vld [vmem:[%s4999_s1 + $0xa8] sm:$0xff]   ;;  %s3221_s21 = sshll.u32 %s3854_s12, 4  ;;  %s3216_s24 = sshll.u32 %s3858_s13, 5 }
  0x1a   : > { %3287 = vmatpush3.bf16.msra.mxu1 %v3619_v3  ;;  %3224 = vmatprep.subr.bf16.mxu0 %v3620_v4  ;;  %v3628_v12 = vld [vmem:[%s4999_s1 + $0x60] sm:$0xff]   ;;  %v3632_v16 = vld [vmem:[%s4999_s1 + $0x58] sm:$0xff]   ;;  %v3636_v20 = vld [vmem:[%s4999_s1 + $0x50] sm:$0xff]   ;;  %s3542_s30 = smul.u32 216, %s174_s8  ;;  %s2874_s12 = sadd.s32 %s3221_s21, %s3216_s24 }
  0x1b   : > { %3288 = vmatprep.subr.bf16.mxu1 %v3621_v5  ;;  %v3629_v13 = vld [vmem:[%s4999_s1 + $0xe0] sm:$0xff]   ;;  %v3633_v17 = vld [vmem:[%s4999_s1 + $0xd8] sm:$0xff]   ;;  %v3637_v21 = vld [vmem:[%s4999_s1 + $0xd0] sm:$0xff]   ;;  %s3217_s13 = sshll.u32 %s2874_s12, 7  ;;  %s3872_s3 = smov [#allocation3]  }
  0x1c   : > { %v3630_v14 = vld [vmem:[%s4999_s1 + $0x20] sm:$0xff]   ;;  %v3634_v18 = vld [vmem:[%s4999_s1 + $0x18] sm:$0xff]   ;;  %v3638_v22 = vld [vmem:[%s4999_s1 + $0x10] sm:$0xff]   ;;  %s177_s26 = scalar_lea.vmem %s4998_s0, %s3542_s30  ;;  %s3782_s4 = sshll.u32 %s3872_s3, 4  ;;  %s3783_s4 = int_to_ptr.vmem [resolvable:$false] %s3782_s4 }
  0x1d   : > { %3225 = vmatpush3.bf16.msra.mxu0 %v3622_v6  ;;  %v3631_v15 = vld [vmem:[%s4999_s1 + $0xa0] sm:$0xff]   ;;  %v3635_v19 = vld [vmem:[%s4999_s1 + $0x98] sm:$0xff]   ;;  %v3639_v23 = vld [vmem:[%s4999_s1 + $0x90] sm:$0xff]   ;;  %s4057_s7 = scalar_lea.vmem %s177_s26, %s3220_s18  ;;  %s4939_s26 = scalar_lea.hbm %s5000_s2, %s3217_s13 }
  0x1e   : > { %3289 = vmatpush3.bf16.msra.mxu1 %v3623_v7  ;;  %3226 = vmatprep.subr.bf16.mxu0 %v3624_v8  ;;  %v3640_v24 = vld [vmem:[%s4999_s1 + $0x48] sm:$0xff]   ;;  %v3644_v28 = vld [vmem:[%s4999_s1 + $0x40] sm:$0xff]   ;;  %vm4070_vm4 = vmor %vm483_vm0, %vm484_vm1  ;;  %s3784_s5 = scalar_lea.vmem %s3783_s4, 4096 }
  0x1f   : > { %3290 = vmatprep.subr.bf16.mxu1 %v3625_v9  ;;  %v3641_v25 = vld [vmem:[%s4999_s1 + $0xc8] sm:$0xff]   ;;  %v3645_v29 = vld [vmem:[%s4999_s1 + $0xc0] sm:$0xff]   ;;  %v4076_v47 = vld [vmem:[%s4057_s7 + $0x10] sm:$0xf] }
  0x20   : > { %v3642_v26 = vld [vmem:[%s4999_s1 + $0x8] sm:$0xff]   ;;  %v3646_v30 = vld [vmem:[%s4999_s1] sm:$0xff]   ;;  %603 = vst [vmem:[#allocation2 + $0x30] sm:$0xf] %v4076_v47  ;;  %v3654_v56 = vld [vmem:[%s4999_s1 + $0x178] sm:$0xff]   ;;  %v628_v61 = vshll.u32 %v4076_v47, 16 }
  0x21   : > { %3227 = vmatpush3.bf16.msra.mxu0 %v3626_v10  ;;  %v3643_v27 = vld [vmem:[%s4999_s1 + $0x88] sm:$0xff]   ;;  %v3647_v31 = vld [vmem:[%s4999_s1 + $0x80] sm:$0xff]   ;;  %v3655_v57 = vld [vmem:[%s4999_s1 + $0x1f8] sm:$0xff]   ;;  %v632_v62 = vshrl.u32 %v4076_v47, 16  ;;  %v868_v6 = vrot.slane %v4076_v47, 5 }
  0x22   : > { %3291 = vmatpush3.bf16.msra.mxu1 %v3627_v11  ;;  %3228 = vmatprep.subr.bf16.mxu0 %v3628_v12  ;;  %v192_v32 = vld [vmem:[%s4057_s7] sm:$0xf]  ;;  %v193_v33 = vld [vmem:[%s4057_s7 + $0x4] sm:$0xf]  ;;  %v194_v34 = vld [vmem:[%s4057_s7 + $0x8] sm:$0x1] }
  0x23   : > { %3292 = vmatprep.subr.bf16.mxu1 %v3629_v13  ;;  %216 = vst [vmem:[#allocation2] sm:$0xf] %v192_v32  ;;  %217 = vst [vmem:[#allocation2 + $0x24] sm:$0xf] %v193_v33  ;;  %v236_v35 = vshrl.u32 %v192_v32, 16  ;;  %v239_v36 = vshll.u32 %v192_v32, 16 }
  0x24   : > { %v245_v37 = vshll.u32 %v193_v33, 16  ;;  %v249_v38 = vshrl.u32 %v193_v33, 16  ;;  %v255_v39 = vshll.u32 %v194_v34, 16  ;;  %v2993_v41 = vrot.slane %v192_v32, 9  ;;  %v3003_v42 = vld [vmem:[%s4057_s7 + $0xc] sm:$0xf]  ;;  %vm4089_vm5 = vmor %vm232_vm2, %vm233_vm3 }
  0x25   : > { %3229 = vmatpush3.bf16.msra.mxu0 %v3630_v14  ;;  %v238_v43 = vrot.slane %v236_v35, 4  ;;  %v241_v44 = vrot.slane %v239_v36, 5  ;;  %v488_v45 = vrot.slane %v193_v33, 5  ;;  %v491_v46 = vrot.slane %v194_v34, 5  ;;  %602 = vst [vmem:[#allocation2 + $0xc] sm:$0xf] %v3003_v42 }
  0x26   : > { %3293 = vmatpush3.bf16.msra.mxu1 %v3631_v15  ;;  %3230 = vmatprep.subr.bf16.mxu0 %v3632_v16  ;;  %v247_v48 = vrot.slane %v245_v37, 5  ;;  %v251_v49 = vrot.slane %v249_v38, 4  ;;  %v257_v50 = vrot.slane %v255_v39, 5  ;;  %v619_v51 = vshrl.u32 %v3003_v42, 16  ;;  %v195_v9 = vld [vmem:[%s4057_s7 + $0xc] sm:$0xf] }
  0x27   : > { %3294 = vmatprep.subr.bf16.mxu1 %v3633_v17  ;;  %v242_v52 = vor.u32 %v241_v44, %v238_v43  ;;  %v489_v53 = vsel %vm4070_vm4, %v2993_v41, %v488_v45  ;;  %v490_v54 = vrot.slane %v488_v45, 4  ;;  %v622_v55 = vshll.u32 %v3003_v42, 16  ;;  %v196_v10 = vld [vmem:[%s4057_s7 + $0x10] sm:$0xf]  ;;  %v197_v11 = vld [vmem:[%s4057_s7 + $0x14] sm:$0x1] }
  0x28   : > { %v252_v59 = vor.u32 %v251_v49, %v247_v48  ;;  %558 = vst [vmem:[#allocation2 + $0x8] sm:$0xf] %v489_v53  ;;  %v621_v60 = vrot.slane %v619_v51, 4  ;;  %v3027_v2 = vrot.slane %v3003_v42, 9  ;;  %v630_v4 = vrot.slane %v628_v61, 5  ;;  %v3656_v38 = vld [vmem:[%s4999_s1 + $0x138] sm:$0xff]  }
  0x29   : > { %3231 = vmatpush3.bf16.msra.mxu0 %v3634_v18  ;;  %v243_v63 = vrot.slane %v242_v52, 4  ;;  %v492_v0 = vsel %vm4070_vm4, %v490_v54, %v491_v46  ;;  %v624_v1 = vrot.slane %v622_v55, 5  ;;  %v634_v5 = vrot.slane %v632_v62, 4  ;;  %218 = vst [vmem:[#allocation2 + $0x48] sm:$0xf] %v195_v9  ;;  %v3664_v41 = vld [vmem:[%s4999_s1 + $0x1f0] sm:$0xff]  }
  0x2a   : > { %3295 = vmatpush3.bf16.msra.mxu1 %v3635_v19  ;;  %3232 = vmatprep.subr.bf16.mxu0 %v3636_v20  ;;  %v253_v3 = vrot.slane %v252_v59, 4  ;;  %559 = vst [vmem:[#allocation2 + $0x2c] sm:$0xf] %v492_v0  ;;  %v869_v14 = vsel %vm4070_vm4, %v3027_v2, %v868_v6  ;;  %219 = vst [vmem:[#allocation2 + $0x6c] sm:$0xf] %v196_v10  ;;  %v260_v15 = vshrl.u32 %v195_v9, 16 }
  0x2b   : > { %3296 = vmatprep.subr.bf16.mxu1 %v3637_v21  ;;  %v248_v7 = vsel %vm4089_vm5, %v243_v63, %v247_v48  ;;  %v625_v12 = vor.u32 %v624_v1, %v621_v60  ;;  %v635_v13 = vor.u32 %v634_v5, %v630_v4  ;;  %v263_v16 = vshll.u32 %v195_v9, 16  ;;  %v4108_v19 = vld [vmem:[%s4057_s7 + $0x18] sm:$0xf]  ;;  %938 = vst [vmem:[#allocation2 + $0x14] sm:$0xf] %v869_v14  ;;  %v3663_v44 = vld [vmem:[%s4999_s1 + $0x170] sm:$0xff]  }
  0x2c   : > { %v258_v8 = vsel %vm4089_vm5, %v253_v3, %v257_v50  ;;  %443 = vst [vmem:[#allocation2 + $0x4] sm:$0xf] %v248_v7  ;;  %v269_v17 = vshll.u32 %v196_v10, 16  ;;  %v273_v18 = vshrl.u32 %v196_v10, 16  ;;  %v279_v20 = vshll.u32 %v197_v11, 16  ;;  %v3665_v52 = vld [vmem:[%s4999_s1 + $0x130] sm:$0xff]  }
  0x2d   : > { %3233 = vmatpush3.bf16.msra.mxu0 %v3638_v22  ;;  %444 = vst [vmem:[#allocation2 + $0x28] sm:$0xf] %v258_v8  ;;  %v2994_v21 = vrot.slane %v195_v9, 9  ;;  %v495_v22 = vrot.slane %v196_v10, 5  ;;  %604 = vst [vmem:[#allocation2 + $0x54] sm:$0xf] %v4108_v19 }
  0x2e   : > { %3297 = vmatpush3.bf16.msra.mxu1 %v3639_v23  ;;  %3234 = vmatprep.subr.bf16.mxu0 %v3640_v24  ;;  %v498_v23 = vrot.slane %v197_v11, 5  ;;  %v4111_v24 = vld [vmem:[%s4057_s7 + $0x1c] sm:$0xf]  ;;  %v3653_v34 = vld [vmem:[#allocation2 + $0xc] ss:$36 sps:$4 sm:$0xff]   ;;  %v626_v37 = vrot.slane %v625_v12, 4 }
  0x2f   : > { %3298 = vmatprep.subr.bf16.mxu1 %v3641_v25  ;;  %v3657_v25 = vld [vmem:[%s4999_s1 + $0x1b8] sm:$0xff]   ;;  %605 = vst [vmem:[#allocation2 + $0x78] sm:$0xf] %v4111_v24  ;;  %v497_v32 = vrot.slane %v495_v22, 4  ;;  %2487 = vmatprep.mubr.bf16.mxu1 %v3653_v34  ;;  %v4133_v46 = vrot.slane %v635_v13, 4  ;;  %v4135_v49 = vrot.slane %v868_v6, 4 }
  0x30   : > { %v631_v45 = vsel %vm4089_vm5, %v626_v37, %v630_v4  ;;  %v3648_v47 = vld [vmem:[#allocation2] ss:$36 sps:$4 sm:$0xff]   ;;  %v3666_v53 = vld [vmem:[%s4999_s1 + $0x1b0] sm:$0xff]   ;;  %v198_v54 = vld [vmem:[%s4057_s7 + $0x18] sm:$0xf] }
  0x31   : > { %3235 = vmatpush3.bf16.msra.mxu0 %v3642_v26  ;;  %v262_v26 = vrot.slane %v260_v15, 4  ;;  %v3651_v33 = vld [vmem:[#allocation2 + $0x8] ss:$36 sps:$4 sm:$0xff]   ;;  %v499_v39 = vsel %vm4070_vm4, %v497_v32, %v498_v23  ;;  %826 = vst [vmem:[#allocation2 + $0x10] sm:$0xf] %v631_v45  ;;  %v284_v59 = vshrl.u32 %v198_v54, 16 }
  0x32   : > { %3299 = vmatpush3.bf16.msra.mxu1 %v3643_v27  ;;  %3236 = vmatprep.subr.bf16.mxu0 %v3644_v28  ;;  %v265_v27 = vrot.slane %v263_v16, 5  ;;  %v271_v28 = vrot.slane %v269_v17, 5  ;;  %561 = vst [vmem:[#allocation2 + $0x74] sm:$0xf] %v499_v39  ;;  %v199_v55 = vld [vmem:[%s4057_s7 + $0x1c] sm:$0xf] }
  0x33   : > { %3300 = vmatprep.subr.bf16.mxu1 %v3645_v29  ;;  %v275_v29 = vrot.slane %v273_v18, 4  ;;  %220 = vst [vmem:[#allocation2 + $0x90] sm:$0xf] %v198_v54  ;;  %221 = vst [vmem:[#allocation2 + $0xb4] sm:$0xf] %v199_v55  ;;  %v287_v60 = vshll.u32 %v198_v54, 16 }
  0x34   : > { %v266_v35 = vor.u32 %v265_v27, %v262_v26  ;;  %v3650_v48 = vld [vmem:[#allocation2 + $0x4] ss:$36 sps:$4 sm:$0xff]   ;;  %v293_v61 = vshll.u32 %v199_v55, 16  ;;  %v297_v62 = vshrl.u32 %v199_v55, 16  ;;  %v2995_v0 = vrot.slane %v198_v54, 9 }
  0x35   : > { %3237 = vmatpush3.bf16.msra.mxu0 %v3646_v30  ;;  %v281_v30 = vrot.slane %v279_v20, 5  ;;  %v276_v36 = vor.u32 %v275_v29, %v271_v28  ;;  %2390 = vmatprep.mubr.bf16.mxu0 %v3650_v48  ;;  %v502_v1 = vrot.slane %v199_v55, 5  ;;  %v3672_v3 = vld [vmem:[%s4999_s1 + $0x168] sm:$0xff]   ;;  %v286_v4 = vrot.slane %v284_v59, 4  ;;  %v4155_v8 = vld [vmem:[%s4057_s7 + $0x24] sm:$0xf] }
  0x36   : > { %3301 = vmatpush3.bf16.msra.mxu1 %v3647_v31  ;;  %3350 = vmatprep.subr.bf16.mxu0 %v3654_v56  ;;  %v496_v31 = vsel %vm4070_vm4, %v2994_v21, %v495_v22  ;;  %v267_v42 = vrot.slane %v266_v35, 4  ;;  %v643_v56 = vshrl.u32 %v4108_v19, 16  ;;  %v289_v5 = vrot.slane %v287_v60, 5  ;;  %v3660_v9 = vld [vmem:[#allocation2 + $0x54] ss:$36 sps:$4 sm:$0xff]   ;;  %v3673_v17 = vld [vmem:[%s4999_s1 + $0x1e8] sm:$0xff]  }
  0x37   : > { %3414 = vmatprep.subr.bf16.mxu1 %v3655_v57  ;;  %560 = vst [vmem:[#allocation2 + $0x50] sm:$0xf] %v496_v31  ;;  %v277_v43 = vrot.slane %v276_v36, 4  ;;  %v200_v57 = vld [vmem:[%s4057_s7 + $0x20] sm:$0x1]  ;;  %v295_v6 = vrot.slane %v293_v61, 5  ;;  %v503_v12 = vsel %vm4070_vm4, %v2995_v0, %v502_v1 }
  0x38   : > { %v272_v50 = vsel %vm4089_vm5, %v267_v42, %v271_v28  ;;  %2391 = vmatmul.mubr.bf16.vlgmr.msra.gmra.mxu0 %v3648_v47  ;;  %v303_v63 = vshll.u32 %v200_v57, 16  ;;  %v505_v2 = vrot.slane %v200_v57, 5  ;;  %v299_v7 = vrot.slane %v297_v62, 4  ;;  %606 = vst [vmem:[#allocation2 + $0x9c] sm:$0xf] %v4155_v8  ;;  %v3674_v27 = vld [vmem:[%s4999_s1 + $0x128] sm:$0xff]  }
  0x39   : > { %2488 = vmatmul.mubr.bf16.vlgmr.msra.gmra.mxu1 %v3651_v33  ;;  %v282_v51 = vsel %vm4089_vm5, %v277_v43, %v281_v30  ;;  %445 = vst [vmem:[#allocation2 + $0x4c] sm:$0xf] %v272_v50  ;;  %3351 = vmatpush3.bf16.msra.mxu0 %v3656_v38  ;;  %v290_v13 = vor.u32 %v289_v5, %v286_v4  ;;  %v504_v15 = vrot.slane %v502_v1, 4  ;;  %562 = vst [vmem:[#allocation2 + $0x98] sm:$0xf] %v503_v12  ;;  %v3675_v31 = vld [vmem:[%s4999_s1 + $0x1a8] sm:$0xff]  }
  0x3a   : > { %3415 = vmatpush3.bf16.msra.mxu1 %v3657_v25  ;;  %446 = vst [vmem:[#allocation2 + $0x70] sm:$0xf] %v282_v51  ;;  %3352 = vmatprep.subr.bf16.mxu0 %v3663_v44  ;;  %v305_v11 = vrot.slane %v303_v63, 5  ;;  %v300_v14 = vor.u32 %v299_v7, %v295_v6  ;;  %v4161_v16 = vld [vmem:[%s4057_s7 + $0x28] sm:$0xf]  ;;  %v4172_v28 = vrot.slane %v643_v56, 4 }
  0x3b   : > { %3416 = vmatprep.subr.bf16.mxu1 %v3664_v41  ;;  %2495 = vmatprep.mubr.bf16.mxu1 %v3660_v9  ;;  %607 = vst [vmem:[#allocation2 + $0xc0] sm:$0xf] %v4161_v16  ;;  %v291_v22 = vrot.slane %v290_v13, 4  ;;  %v506_v25 = vsel %vm4070_vm4, %v504_v15, %v505_v2  ;;  %v646_v32 = vshll.u32 %v4108_v19, 16  ;;  %v201_v33 = vld [vmem:[%s4057_s7 + $0x24] sm:$0xf] }
  0x3c   : > { %v301_v23 = vrot.slane %v300_v14, 4  ;;  %563 = vst [vmem:[#allocation2 + $0xbc] sm:$0xf] %v506_v25  ;;  %v202_v34 = vld [vmem:[%s4057_s7 + $0x28] sm:$0xf]  ;;  %v308_v36 = vshrl.u32 %v201_v33, 16 }
  0x3d   : > { %3353 = vmatpush3.bf16.msra.mxu0 %v3665_v52  ;;  %v296_v29 = vsel %vm4089_vm5, %v291_v22, %v295_v6  ;;  %v203_v35 = vld [vmem:[%s4057_s7 + $0x2c] sm:$0x1]  ;;  %222 = vst [vmem:[#allocation2 + $0xd8] sm:$0xf] %v201_v33  ;;  %223 = vst [vmem:[#allocation2 + $0xfc] sm:$0xf] %v202_v34 }
  0x3e   : > { %3417 = vmatpush3.bf16.msra.mxu1 %v3666_v53  ;;  %v3662_v10 = vld [vmem:[#allocation2 + $0x50] ss:$36 sps:$4 sm:$0xff]   ;;  %3354 = vmatprep.subr.bf16.mxu0 %v3672_v3  ;;  %v306_v30 = vsel %vm4089_vm5, %v301_v23, %v305_v11  ;;  %447 = vst [vmem:[#allocation2 + $0x94] sm:$0xf] %v296_v29  ;;  %v311_v37 = vshll.u32 %v201_v33, 16  ;;  %v317_v38 = vshll.u32 %v202_v34, 16 }
  0x3f   : > { %3418 = vmatprep.subr.bf16.mxu1 %v3673_v17  ;;  %448 = vst [vmem:[#allocation2 + $0xb8] sm:$0xf] %v306_v30  ;;  %v321_v39 = vshrl.u32 %v202_v34, 16  ;;  %v4186_v41 = vld [vmem:[%s4057_s7 + $0x30] sm:$0xf]  ;;  %v327_v42 = vshll.u32 %v203_v35, 16 }
  0x40   : > { %v1344_v18 = vld [vmem:[#allocation2 + $0x48] sm:$0xff]  ;;  %v2996_v43 = vrot.slane %v201_v33, 9  ;;  %v509_v44 = vrot.slane %v202_v34, 5  ;;  %v512_v45 = vrot.slane %v203_v35, 5  ;;  %608 = vst [vmem:[#allocation2 + $0xe4] sm:$0xf] %v4186_v41 }
  0x41   : > { %v1349_v20 = vld [vmem:[#allocation2 + $0x6c] sm:$0xff]  ;;  %2496 = vmatmul.mubr.bf16.gmra.mxu1 %v3662_v10  ;;  %3355 = vmatpush3.bf16.msra.mxu0 %v3674_v27  ;;  %v3681_v47 = vld [vmem:[%s4999_s1 + $0x160] sm:$0xff]   ;;  %v310_v48 = vrot.slane %v308_v36, 4  ;;  %v313_v50 = vrot.slane %v311_v37, 5  ;;  %v319_v51 = vrot.slane %v317_v38, 5  ;;  %v323_v52 = vrot.slane %v321_v39, 4 }
  0x42   : > { %v3658_v21 = vld [vmem:[#allocation2 + $0x4c] ss:$36 sps:$4 sm:$0xff]   ;;  %v3078_v26 = vcombine.low %v1344_v18, %v1349_v20  ;;  %3419 = vmatpush3.bf16.msra.mxu1 %v3675_v31  ;;  %v4193_v53 = vld [vmem:[%s4057_s7 + $0x34] sm:$0xf]  ;;  %v329_v54 = vrot.slane %v327_v42, 5  ;;  %v510_v55 = vsel %vm4070_vm4, %v2996_v43, %v509_v44  ;;  %v511_v56 = vrot.slane %v509_v44, 4  ;;  %3356 = vmatprep.subr.bf16.mxu0 %v3681_v47 }
  0x43   : > { %2398 = vmatprep.mubr.bf16.mxu0 %v3658_v21  ;;  %609 = vst [vmem:[#allocation2 + $0x108] sm:$0xf] %v4193_v53  ;;  %v3669_v57 = vld [vmem:[#allocation2 + $0x9c] ss:$36 sps:$4 sm:$0xff]   ;;  %v314_v60 = vor.u32 %v313_v50, %v310_v48  ;;  %v324_v61 = vor.u32 %v323_v52, %v319_v51  ;;  %564 = vst [vmem:[#allocation2 + $0xe0] sm:$0xf] %v510_v55 }
  0x44   : > { %2399 = vmatmul.mubr.bf16.gmra.mxu0 %v3078_v26  ;;  %v3671_v59 = vld [vmem:[#allocation2 + $0x98] ss:$36 sps:$4 sm:$0xff]   ;;  %v648_v62 = vrot.slane %v646_v32, 5  ;;  %v513_v63 = vsel %vm4070_vm4, %v511_v56, %v512_v45  ;;  %v3682_v0 = vld [vmem:[%s4999_s1 + $0x1e0] sm:$0xff]   ;;  %v652_v1 = vshll.u32 %v4111_v24, 16  ;;  %2503 = vmatprep.mubr.bf16.mxu1 %v3669_v57 }
  0x45   : > { %v1354_v2 = vld [vmem:[#allocation2 + $0x90] sm:$0xff]  ;;  %v315_v5 = vrot.slane %v314_v60, 4  ;;  %v325_v6 = vrot.slane %v324_v61, 4  ;;  %565 = vst [vmem:[#allocation2 + $0x104] sm:$0xf] %v513_v63  ;;  %3420 = vmatprep.subr.bf16.mxu1 %v3682_v0  ;;  %v3683_v10 = vld [vmem:[%s4999_s1 + $0x120] sm:$0xff]  }
  0x46   : > { %v1359_v3 = vld [vmem:[#allocation2 + $0xb4] sm:$0xff]  ;;  %v649_v7 = vor.u32 %v648_v62, %v4172_v28  ;;  %v4208_v11 = vrot.slane %v652_v1, 5  ;;  %v3684_v14 = vld [vmem:[%s4999_s1 + $0x1a0] sm:$0xff]   ;;  %v204_v17 = vld [vmem:[%s4057_s7 + $0x30] sm:$0xf]  ;;  %3357 = vmatpush3.bf16.msra.mxu0 %v3683_v10  ;;  %v656_v60 = vshrl.u32 %v4111_v24, 16 }
  0x47   : > { %v3667_v4 = vld [vmem:[#allocation2 + $0x94] ss:$36 sps:$4 sm:$0xff]   ;;  %v3087_v9 = vcombine.low %v1354_v2, %v1359_v3  ;;  %v320_v12 = vsel %vm4089_vm5, %v315_v5, %v319_v51  ;;  %v330_v13 = vsel %vm4089_vm5, %v325_v6, %v329_v54  ;;  %3421 = vmatpush3.bf16.msra.mxu1 %v3684_v14  ;;  %224 = vst [vmem:[#allocation2 + $0x120] sm:$0xf] %v204_v17  ;;  %v332_v21 = vshrl.u32 %v204_v17, 16 }
  0x48   : > { %2406 = vmatprep.mubr.bf16.mxu0 %v3667_v4  ;;  %v650_v15 = vrot.slane %v649_v7, 4  ;;  %449 = vst [vmem:[#allocation2 + $0xdc] sm:$0xf] %v320_v12  ;;  %450 = vst [vmem:[#allocation2 + $0x100] sm:$0xf] %v330_v13  ;;  %v335_v22 = vshll.u32 %v204_v17, 16 }
  0x49   : > { %2504 = vmatmul.mubr.bf16.gmra.mxu1 %v3671_v59  ;;  %v205_v18 = vld [vmem:[%s4057_s7 + $0x34] sm:$0xf]  ;;  %v206_v20 = vld [vmem:[%s4057_s7 + $0x38] sm:$0x1]  ;;  %v4221_v26 = vld [vmem:[%s4057_s7 + $0x3c] sm:$0xf] }
  0x4a   : > { %225 = vst [vmem:[#allocation2 + $0x144] sm:$0xf] %v205_v18  ;;  %v341_v23 = vshll.u32 %v205_v18, 16  ;;  %v345_v25 = vshrl.u32 %v205_v18, 16  ;;  %v351_v27 = vshll.u32 %v206_v20, 16  ;;  %v2997_v28 = vrot.slane %v204_v17, 9 }
  0x4b   : > { %v516_v29 = vrot.slane %v205_v18, 5  ;;  %v519_v30 = vrot.slane %v206_v20, 5  ;;  %610 = vst [vmem:[#allocation2 + $0x12c] sm:$0xf] %v4221_v26  ;;  %v3690_v31 = vld [vmem:[%s4999_s1 + $0x158] sm:$0xff]   ;;  %v334_v32 = vrot.slane %v332_v21, 4  ;;  %v655_v43 = vsel %vm4089_vm5, %v650_v15, %v4208_v11 }
  0x4c   : > { %2407 = vmatmul.mubr.bf16.gmra.mxu0 %v3087_v9  ;;  %v337_v33 = vrot.slane %v335_v22, 5  ;;  %v343_v34 = vrot.slane %v341_v23, 5  ;;  %v347_v35 = vrot.slane %v345_v25, 4  ;;  %v4228_v36 = vld [vmem:[%s4057_s7 + $0x40] sm:$0xf]  ;;  %v353_v39 = vrot.slane %v351_v27, 5  ;;  %3358 = vmatprep.subr.bf16.mxu0 %v3690_v31 }
  0x4d   : > { %v3678_v37 = vld [vmem:[#allocation2 + $0xe4] ss:$36 sps:$4 sm:$0xff]   ;;  %v517_v42 = vsel %vm4070_vm4, %v2997_v28, %v516_v29  ;;  %611 = vst [vmem:[#allocation2 + $0x150] sm:$0xf] %v4228_v36  ;;  %v518_v47 = vrot.slane %v516_v29, 4  ;;  %v3691_v48 = vld [vmem:[%s4999_s1 + $0x1d8] sm:$0xff]  }
  0x4e   : > { %v3680_v38 = vld [vmem:[#allocation2 + $0xe0] ss:$36 sps:$4 sm:$0xff]   ;;  %v338_v44 = vor.u32 %v337_v33, %v334_v32  ;;  %v348_v45 = vor.u32 %v347_v35, %v343_v34  ;;  %566 = vst [vmem:[#allocation2 + $0x128] sm:$0xf] %v517_v42  ;;  %828 = vst [vmem:[#allocation2 + $0x58] sm:$0xf] %v655_v43  ;;  %2511 = vmatprep.mubr.bf16.mxu1 %v3678_v37  ;;  %3422 = vmatprep.subr.bf16.mxu1 %v3691_v48 }
  0x4f   : > { %v1364_v50 = vld [vmem:[#allocation2 + $0xd8] sm:$0xff]  ;;  %v520_v56 = vsel %vm4070_vm4, %v518_v47, %v519_v30  ;;  %v3028_v1 = vrot.slane %v4108_v19, 9  ;;  %v208_v2 = vld [vmem:[%s4057_s7 + $0x40] sm:$0xf]  ;;  %v209_v3 = vld [vmem:[%s4057_s7 + $0x44] sm:$0x1] }
  0x50   : > { %v1369_v51 = vld [vmem:[#allocation2 + $0xfc] sm:$0xff]  ;;  %v339_v54 = vrot.slane %v338_v44, 4  ;;  %v349_v55 = vrot.slane %v348_v45, 4  ;;  %567 = vst [vmem:[#allocation2 + $0x14c] sm:$0xf] %v520_v56  ;;  %v365_v6 = vshll.u32 %v208_v2, 16 }
  0x51   : > { %v3676_v52 = vld [vmem:[#allocation2 + $0xdc] ss:$36 sps:$4 sm:$0xff]   ;;  %2512 = vmatmul.mubr.bf16.gmra.mxu1 %v3680_v38  ;;  %v3096_v57 = vcombine.low %v1364_v50, %v1369_v51  ;;  %227 = vst [vmem:[#allocation2 + $0x18c] sm:$0xf] %v208_v2  ;;  %v369_v7 = vshrl.u32 %v208_v2, 16  ;;  %v375_v9 = vshll.u32 %v209_v3, 16 }
  0x52   : > { %v3692_v59 = vld [vmem:[%s4999_s1 + $0x118] sm:$0xff]   ;;  %2414 = vmatprep.mubr.bf16.mxu0 %v3676_v52  ;;  %v344_v61 = vsel %vm4089_vm5, %v339_v54, %v343_v34  ;;  %v354_v62 = vsel %vm4089_vm5, %v349_v55, %v353_v39  ;;  %v4257_v12 = vld [vmem:[%s4057_s7 + $0x48] sm:$0xf]  ;;  %v523_v14 = vrot.slane %v208_v2, 5  ;;  %v526_v15 = vrot.slane %v209_v3, 5  ;;  %v3699_v17 = vld [vmem:[%s4999_s1 + $0x150] sm:$0xff]  }
  0x53   : > { %v3693_v63 = vld [vmem:[%s4999_s1 + $0x198] sm:$0xff]   ;;  %451 = vst [vmem:[#allocation2 + $0x124] sm:$0xf] %v344_v61  ;;  %452 = vst [vmem:[#allocation2 + $0x148] sm:$0xf] %v354_v62  ;;  %3359 = vmatpush3.bf16.msra.mxu0 %v3692_v59  ;;  %v367_v18 = vrot.slane %v365_v6, 5 }
  0x54   : > { %v207_v0 = vld [vmem:[%s4057_s7 + $0x3c] sm:$0xf]  ;;  %2415 = vmatmul.mubr.bf16.gmra.mxu0 %v3096_v57  ;;  %3423 = vmatpush3.bf16.msra.mxu1 %v3693_v63  ;;  %612 = vst [vmem:[#allocation2 + $0x174] sm:$0xf] %v4257_v12  ;;  %v371_v20 = vrot.slane %v369_v7, 4  ;;  %v377_v21 = vrot.slane %v375_v9, 5 }
  0x55   : > { %226 = vst [vmem:[#allocation2 + $0x168] sm:$0xf] %v207_v0  ;;  %v356_v4 = vshrl.u32 %v207_v0, 16  ;;  %v359_v5 = vshll.u32 %v207_v0, 16  ;;  %v2998_v10 = vrot.slane %v207_v0, 9  ;;  %v3700_v23 = vld [vmem:[%s4999_s1 + $0x1d0] sm:$0xff]   ;;  %3360 = vmatprep.subr.bf16.mxu0 %v3699_v17 }
  0x56   : > { %v4264_v22 = vld [vmem:[%s4057_s7 + $0x4c] sm:$0xf]  ;;  %v525_v28 = vrot.slane %v523_v14, 4  ;;  %v3701_v29 = vld [vmem:[%s4999_s1 + $0x110] sm:$0xff]   ;;  %v372_v32 = vor.u32 %v371_v20, %v367_v18  ;;  %3424 = vmatprep.subr.bf16.mxu1 %v3700_v23  ;;  %v658_v33 = vrot.slane %v656_v60, 4  ;;  %v875_v44 = vrot.slane %v4111_v24, 5 }
  0x57   : > { %v358_v19 = vrot.slane %v356_v4, 4  ;;  %v361_v13 = vrot.slane %v359_v5, 5  ;;  %v524_v27 = vsel %vm4070_vm4, %v2998_v10, %v523_v14  ;;  %613 = vst [vmem:[#allocation2 + $0x198] sm:$0xf] %v4264_v22  ;;  %v3687_v30 = vld [vmem:[#allocation2 + $0x12c] ss:$36 sps:$4 sm:$0xff]   ;;  %3361 = vmatpush3.bf16.msra.mxu0 %v3701_v29 }
  0x58   : > { %v3689_v31 = vld [vmem:[#allocation2 + $0x128] ss:$36 sps:$4 sm:$0xff]   ;;  %568 = vst [vmem:[#allocation2 + $0x170] sm:$0xf] %v524_v27  ;;  %v527_v35 = vsel %vm4070_vm4, %v525_v28, %v526_v15  ;;  %v3702_v37 = vld [vmem:[%s4999_s1 + $0x190] sm:$0xff]   ;;  %2519 = vmatprep.mubr.bf16.mxu1 %v3687_v30  ;;  %v373_v43 = vrot.slane %v372_v32, 4  ;;  %v659_v52 = vor.u32 %v658_v33, %v4208_v11  ;;  %v876_v54 = vsel %vm4070_vm4, %v3028_v1, %v875_v44 }
  0x59   : > { %v362_v25 = vor.u32 %v361_v13, %v358_v19  ;;  %569 = vst [vmem:[#allocation2 + $0x194] sm:$0xf] %v527_v35  ;;  %2520 = vmatmul.mubr.bf16.gmra.mxu1 %v3689_v31  ;;  %v210_v50 = vld [vmem:[%s4057_s7 + $0x48] sm:$0xf]  ;;  %v211_v51 = vld [vmem:[%s4057_s7 + $0x4c] sm:$0xf] }
  0x5a   : > { %v1374_v38 = vld [vmem:[#allocation2 + $0x120] sm:$0xff]  ;;  %v378_v48 = vsel %vm4089_vm5, %v373_v43, %v377_v21  ;;  %3425 = vmatpush3.bf16.msra.mxu1 %v3702_v37  ;;  %v212_v24 = vld [vmem:[%s4057_s7 + $0x50] sm:$0x1]  ;;  %228 = vst [vmem:[#allocation2 + $0x1b0] sm:$0xf] %v210_v50  ;;  %v380_v55 = vshrl.u32 %v210_v50, 16 }
  0x5b   : > { %v363_v34 = vrot.slane %v362_v25, 4  ;;  %v1379_v39 = vld [vmem:[#allocation2 + $0x144] sm:$0xff]  ;;  %454 = vst [vmem:[#allocation2 + $0x190] sm:$0xf] %v378_v48  ;;  %229 = vst [vmem:[#allocation2 + $0x1d4] sm:$0xf] %v211_v51 }
  0x5c   : > { %v3685_v42 = vld [vmem:[#allocation2 + $0x124] ss:$36 sps:$4 sm:$0xff]   ;;  %v3105_v45 = vcombine.low %v1374_v38, %v1379_v39  ;;  %v383_v56 = vshll.u32 %v210_v50, 16  ;;  %v389_v57 = vshll.u32 %v211_v51, 16  ;;  %v393_v59 = vshrl.u32 %v211_v51, 16 }
  0x5d   : > { %v368_v47 = vsel %vm4089_vm5, %v363_v34, %v367_v18  ;;  %2422 = vmatprep.mubr.bf16.mxu0 %v3685_v42  ;;  %940 = vst [vmem:[#allocation2 + $0x5c] sm:$0xf] %v876_v54  ;;  %v399_v60 = vshll.u32 %v212_v24, 16  ;;  %v2999_v61 = vrot.slane %v210_v50, 9  ;;  %v530_v62 = vrot.slane %v211_v51, 5  ;;  %v3708_v4 = vld [vmem:[%s4999_s1 + $0x148] sm:$0xff]  }
  0x5e   : > { %453 = vst [vmem:[#allocation2 + $0x16c] sm:$0xf] %v368_v47  ;;  %2423 = vmatmul.mubr.bf16.gmra.mxu0 %v3105_v45  ;;  %v533_v63 = vrot.slane %v212_v24, 5  ;;  %v4292_v11 = vld [vmem:[%s4057_s7 + $0x54] sm:$0xf]  ;;  %v382_v0 = vrot.slane %v380_v55, 4  ;;  %3362 = vmatprep.subr.bf16.mxu0 %v3708_v4 }
  0x5f   : > { %v385_v2 = vrot.slane %v383_v56, 5  ;;  %v391_v1 = vrot.slane %v389_v57, 5  ;;  %v395_v3 = vrot.slane %v393_v59, 4  ;;  %614 = vst [vmem:[#allocation2 + $0x1bc] sm:$0xf] %v4292_v11  ;;  %v401_v5 = vrot.slane %v399_v60, 5 }
  0x60   : > { %v531_v6 = vsel %vm4070_vm4, %v2999_v61, %v530_v62  ;;  %v532_v7 = vrot.slane %v530_v62, 4  ;;  %v4301_v9 = vld [vmem:[%s4057_s7 + $0x58] sm:$0xf]  ;;  %v3698_v19 = vld [vmem:[#allocation2 + $0x170] ss:$36 sps:$4 sm:$0xff]   ;;  %v4304_v15 = vrot.slane %v659_v52, 4 }
  0x61   : > { %v3696_v10 = vld [vmem:[#allocation2 + $0x174] ss:$36 sps:$4 sm:$0xff]   ;;  %v386_v13 = vor.u32 %v385_v2, %v382_v0  ;;  %v396_v14 = vor.u32 %v395_v3, %v391_v1  ;;  %570 = vst [vmem:[#allocation2 + $0x1b8] sm:$0xf] %v531_v6  ;;  %615 = vst [vmem:[#allocation2 + $0x1e0] sm:$0xf] %v4301_v9 }
  0x62   : > { %v534_v17 = vsel %vm4070_vm4, %v532_v7, %v533_v63  ;;  %2527 = vmatprep.mubr.bf16.mxu1 %v3696_v10  ;;  %v3709_v23 = vld [vmem:[%s4999_s1 + $0x1c8] sm:$0xff]   ;;  %v4311_v28 = vrot.slane %v875_v44, 4  ;;  %v667_v33 = vshrl.u32 %v4155_v8, 16  ;;  %v213_v35 = vld [vmem:[%s4057_s7 + $0x54] sm:$0xf]  ;;  %v670_v38 = vshll.u32 %v4155_v8, 16 }
  0x63   : > { %v387_v20 = vrot.slane %v386_v13, 4  ;;  %v397_v21 = vrot.slane %v396_v14, 4  ;;  %571 = vst [vmem:[#allocation2 + $0x1dc] sm:$0xf] %v534_v17  ;;  %v1389_v25 = vld [vmem:[#allocation2 + $0x18c] sm:$0xff]  ;;  %2528 = vmatmul.mubr.bf16.gmra.mxu1 %v3698_v19  ;;  %3426 = vmatprep.subr.bf16.mxu1 %v3709_v23  ;;  %v404_v42 = vshrl.u32 %v213_v35, 16 }
  0x64   : > { %v3710_v32 = vld [vmem:[%s4999_s1 + $0x108] sm:$0xff]   ;;  %v214_v37 = vld [vmem:[%s4057_s7 + $0x58] sm:$0xf]  ;;  %v215_v39 = vld [vmem:[%s4057_s7 + $0x5c] sm:$0x1]  ;;  %v407_v43 = vshll.u32 %v213_v35, 16 }
  0x65   : > { %v1384_v18 = vld [vmem:[#allocation2 + $0x168] sm:$0xff]  ;;  %v392_v30 = vsel %vm4089_vm5, %v387_v20, %v391_v1  ;;  %v402_v31 = vsel %vm4089_vm5, %v397_v21, %v401_v5  ;;  %230 = vst [vmem:[#allocation2 + $0x1f8] sm:$0xf] %v213_v35  ;;  %231 = vst [vmem:[#allocation2 + $0x21c] sm:$0xf] %v214_v37  ;;  %v413_v44 = vshll.u32 %v214_v37, 16  ;;  %3363 = vmatpush3.bf16.msra.mxu0 %v3710_v32 }
  0x66   : > { %v3694_v27 = vld [vmem:[#allocation2 + $0x16c] ss:$36 sps:$4 sm:$0xff]   ;;  %v3114_v29 = vcombine.low %v1384_v18, %v1389_v25  ;;  %455 = vst [vmem:[#allocation2 + $0x1b4] sm:$0xf] %v392_v30  ;;  %456 = vst [vmem:[#allocation2 + $0x1d8] sm:$0xf] %v402_v31 }
  0x67   : > { %2430 = vmatprep.mubr.bf16.mxu0 %v3694_v27  ;;  %v3711_v34 = vld [vmem:[%s4999_s1 + $0x188] sm:$0xff]   ;;  %v417_v45 = vshrl.u32 %v214_v37, 16  ;;  %v423_v47 = vshll.u32 %v215_v39, 16  ;;  %v3000_v48 = vrot.slane %v213_v35, 9  ;;  %v537_v50 = vrot.slane %v214_v37, 5  ;;  %v3717_v52 = vld [vmem:[%s4999_s1 + $0x140] sm:$0xff]  }
  0x68   : > { %2431 = vmatmul.mubr.bf16.gmra.mxu0 %v3114_v29  ;;  %3427 = vmatpush3.bf16.msra.mxu1 %v3711_v34  ;;  %v540_v51 = vrot.slane %v215_v39, 5  ;;  %v406_v54 = vrot.slane %v404_v42, 4  ;;  %v409_v24 = vrot.slane %v407_v43, 5  ;;  %v415_v55 = vrot.slane %v413_v44, 5  ;;  %v4332_v57 = vld [vmem:[%s4057_s7 + $0x60] sm:$0xf] }
  0x69   : > { %v419_v56 = vrot.slane %v417_v45, 4  ;;  %v3705_v59 = vld [vmem:[#allocation2 + $0x1bc] ss:$36 sps:$4 sm:$0xff]   ;;  %v425_v61 = vrot.slane %v423_v47, 5  ;;  %v538_v62 = vsel %vm4070_vm4, %v3000_v48, %v537_v50  ;;  %616 = vst [vmem:[#allocation2 + $0x204] sm:$0xf] %v4332_v57  ;;  %3364 = vmatprep.subr.bf16.mxu0 %v3717_v52 }
  0x6a   : > { %v3707_v60 = vld [vmem:[#allocation2 + $0x1b8] ss:$36 sps:$4 sm:$0xff]   ;;  %v410_v63 = vor.u32 %v409_v24, %v406_v54  ;;  %v539_v2 = vrot.slane %v537_v50, 4  ;;  %572 = vst [vmem:[#allocation2 + $0x200] sm:$0xf] %v538_v62  ;;  %v3718_v3 = vld [vmem:[%s4999_s1 + $0x1c0] sm:$0xff]   ;;  %2535 = vmatprep.mubr.bf16.mxu1 %v3705_v59 }
  0x6b   : > { %v420_v0 = vor.u32 %v419_v56, %v415_v55  ;;  %v4338_v1 = vld [vmem:[%s4057_s7 + $0x64] sm:$0xf]  ;;  %2536 = vmatmul.mubr.bf16.gmra.mxu1 %v3707_v60  ;;  %3428 = vmatprep.subr.bf16.mxu1 %v3718_v3  ;;  %v4349_v17 = vrot.slane %v667_v33, 4  ;;  %v4358_v23 = vrot.slane %v670_v38, 5  ;;  %v3005_v25 = vld [vmem:[%s4057_s7 + $0x14] sm:$0x1] }
  0x6c   : > { %617 = vst [vmem:[#allocation2 + $0x228] sm:$0xf] %v4338_v1  ;;  %v411_v7 = vrot.slane %v410_v63, 4  ;;  %v541_v19 = vsel %vm4070_vm4, %v539_v2, %v540_v51  ;;  %v3719_v14 = vld [vmem:[%s4999_s1 + $0x100] sm:$0xff]   ;;  %v4362_v27 = vld [vmem:[%s4057_s7 + $0x18] sm:$0xf] }
  0x6d   : > { %v1394_v4 = vld [vmem:[#allocation2 + $0x1b0] sm:$0xff]  ;;  %v421_v10 = vrot.slane %v420_v0, 4  ;;  %573 = vst [vmem:[#allocation2 + $0x224] sm:$0xf] %v541_v19  ;;  %v3720_v21 = vld [vmem:[%s4999_s1 + $0x180] sm:$0xff]   ;;  %v676_v29 = vshll.u32 %v4161_v16, 16  ;;  %3365 = vmatpush3.bf16.msra.mxu0 %v3719_v14  ;;  %v673_v3 = vor.u32 %v4358_v23, %v4349_v17 }
  0x6e   : > { %v1399_v5 = vld [vmem:[#allocation2 + $0x1d4] sm:$0xff]  ;;  %v416_v18 = vsel %vm4089_vm5, %v411_v7, %v415_v55  ;;  %3429 = vmatpush3.bf16.msra.mxu1 %v3720_v21  ;;  %v638_v30 = vshll.u32 %v3005_v25, 16  ;;  %v871_v31 = vrot.slane %v3005_v25, 5  ;;  %v4366_v32 = vld [vmem:[%s4057_s7 + $0x1c] sm:$0xf]  ;;  %v999_v34 = vshrl.u32 %v4362_v27, 16 }
  0x6f   : > { %v3703_v6 = vld [vmem:[#allocation2 + $0x1b4] ss:$36 sps:$4 sm:$0xff]   ;;  %v3123_v13 = vcombine.low %v1394_v4, %v1399_v5  ;;  %v426_v20 = vsel %vm4089_vm5, %v421_v10, %v425_v61  ;;  %457 = vst [vmem:[#allocation2 + $0x1fc] sm:$0xf] %v416_v18  ;;  %v4369_v33 = vld [vmem:[%s4057_s7 + $0x20] sm:$0x1] }
  0x70   : > { %2438 = vmatprep.mubr.bf16.mxu0 %v3703_v6  ;;  %458 = vst [vmem:[#allocation2 + $0x220] sm:$0xf] %v426_v20  ;;  %982 = vst [vmem:[#allocation2 + $0x18] sm:$0xf] %v4362_v27  ;;  %v1002_v35 = vshll.u32 %v4362_v27, 16  ;;  %v1008_v37 = vshll.u32 %v4366_v32, 16  ;;  %v872_v43 = vsel %vm4070_vm4, %v4135_v49, %v871_v31 }
  0x71   : > { %2439 = vmatmul.mubr.bf16.gmra.mxu0 %v3123_v13  ;;  %983 = vst [vmem:[#allocation2 + $0x3c] sm:$0xf] %v4366_v32  ;;  %v1012_v38 = vshrl.u32 %v4366_v32, 16  ;;  %v4380_v39 = vld [vmem:[%s4999_s1 + $0x238] sm:$0xff]   ;;  %v640_v42 = vrot.slane %v638_v30, 5  ;;  %v1018_v44 = vshll.u32 %v4369_v33, 16 }
  0x72   : > { %939 = vst [vmem:[#allocation2 + $0x38] sm:$0xf] %v872_v43  ;;  %v1001_v45 = vrot.slane %v999_v34, 4  ;;  %v1004_v47 = vrot.slane %v1002_v35, 5  ;;  %v1010_v48 = vrot.slane %v1008_v37, 5  ;;  %3494 = vmatprep.subr.bf16.mxu0 %v4380_v39  ;;  %3526 = vmatprep.subr.bf16.mxu1 %v4380_v39 }
  0x73   : > { %v1014_v50 = vrot.slane %v1012_v38, 4  ;;  %v3008_v51 = vld [vmem:[%s4057_s7 + $0x20] sm:$0x1]  ;;  %v3714_v52 = vld [vmem:[#allocation2 + $0x204] ss:$36 sps:$4 sm:$0xff]   ;;  %v641_v24 = vsel %vm4089_vm5, %v4133_v46, %v640_v42  ;;  %v1020_v49 = vrot.slane %v1018_v44, 5 }
  0x74   : > { %v3716_v54 = vld [vmem:[#allocation2 + $0x200] ss:$36 sps:$4 sm:$0xff]   ;;  %827 = vst [vmem:[#allocation2 + $0x34] sm:$0xf] %v641_v24  ;;  %v1005_v55 = vor.u32 %v1004_v47, %v1001_v45  ;;  %v662_v59 = vshll.u32 %v3008_v51, 16  ;;  %v878_v60 = vrot.slane %v3008_v51, 5  ;;  %2543 = vmatprep.mubr.bf16.mxu1 %v3714_v52 }
  0x75   : > { %v1015_v56 = vor.u32 %v1014_v50, %v1010_v48  ;;  %v4393_v61 = vld [vmem:[%s4057_s7 + $0x24] sm:$0xf]  ;;  %2544 = vmatmul.mubr.bf16.gmra.mxu1 %v3716_v54  ;;  %v4401_v10 = vld [vmem:[%s4057_s7 + $0x28] sm:$0xf]  ;;  %v4407_v13 = vld [vmem:[%s4057_s7 + $0x2c] sm:$0x1] }
  0x76   : > { %v1404_v62 = vld [vmem:[#allocation2 + $0x1f8] sm:$0xff]  ;;  %984 = vst [vmem:[#allocation2 + $0x60] sm:$0xf] %v4393_v61  ;;  %v1023_v2 = vshrl.u32 %v4393_v61, 16  ;;  %v1026_v46 = vshll.u32 %v4393_v61, 16  ;;  %v1006_v5 = vrot.slane %v1005_v55, 4  ;;  %v879_v19 = vsel %vm4070_vm4, %v4311_v28, %v878_v60 }
  0x77   : > { %v1409_v63 = vld [vmem:[#allocation2 + $0x21c] sm:$0xff]  ;;  %v1016_v6 = vrot.slane %v1015_v56, 4  ;;  %v664_v7 = vrot.slane %v662_v59, 5  ;;  %985 = vst [vmem:[#allocation2 + $0x84] sm:$0xf] %v4401_v10  ;;  %v1032_v17 = vshll.u32 %v4401_v10, 16 }
  0x78   : > { %v3712_v0 = vld [vmem:[#allocation2 + $0x1fc] ss:$36 sps:$4 sm:$0xff]   ;;  %v3132_v4 = vcombine.low %v1404_v62, %v1409_v63  ;;  %v1025_v14 = vrot.slane %v1023_v2, 4  ;;  %v1028_v18 = vrot.slane %v1026_v46, 5  ;;  %v1011_v20 = vsel %vm4089_vm5, %v1006_v5, %v1010_v48  ;;  %941 = vst [vmem:[#allocation2 + $0x80] sm:$0xf] %v879_v19 }
  0x79   : > { %2446 = vmatprep.mubr.bf16.mxu0 %v3712_v0  ;;  %v1021_v21 = vsel %vm4089_vm5, %v1016_v6, %v1020_v49  ;;  %v665_v28 = vsel %vm4089_vm5, %v4304_v15, %v664_v7  ;;  %v1036_v23 = vshrl.u32 %v4401_v10, 16  ;;  %1206 = vst [vmem:[#allocation2 + $0x1c] sm:$0xf] %v1011_v20  ;;  %v1034_v30 = vrot.slane %v1032_v17, 5  ;;  %v3011_v35 = vld [vmem:[%s4057_s7 + $0x2c] sm:$0x1] }
  0x7a   : > { %2447 = vmatmul.mubr.bf16.gmra.mxu0 %v3132_v4  ;;  %1207 = vst [vmem:[#allocation2 + $0x40] sm:$0xf] %v1021_v21  ;;  %829 = vst [vmem:[#allocation2 + $0x7c] sm:$0xf] %v665_v28  ;;  %v1029_v25 = vor.u32 %v1028_v18, %v1025_v14  ;;  %v1042_v31 = vshll.u32 %v4407_v13, 16  ;;  %v3062_v34 = vrot.slane %v4393_v61, 9 }
  0x7b   : > { %v1038_v37 = vrot.slane %v1036_v23, 4  ;;  %v1255_v38 = vrot.slane %v4401_v10, 5  ;;  %v1258_v42 = vrot.slane %v4407_v13, 5  ;;  %v674_v15 = vrot.slane %v673_v3, 4  ;;  %v4425_v43 = vld [vmem:[%s4057_s7 + $0x30] sm:$0xf] }
  0x7c   : > { %v3721_v44 = vld [vmem:[#allocation2 + $0x10] ss:$36 sps:$4 sm:$0xff]   ;;  %v1030_v47 = vrot.slane %v1029_v25, 4  ;;  %986 = vst [vmem:[#allocation2 + $0xa8] sm:$0xf] %v4425_v43  ;;  %v1044_v50 = vrot.slane %v1042_v31, 5 }
  0x7d   : > { %v3723_v45 = vld [vmem:[#allocation2 + $0x14] ss:$36 sps:$4 sm:$0xff]   ;;  %v1039_v48 = vor.u32 %v1038_v37, %v1034_v30  ;;  %v1257_v51 = vrot.slane %v1255_v38, 4  ;;  %v678_v52 = vrot.slane %v676_v29, 5  ;;  %v680_v55 = vshrl.u32 %v4161_v16, 16 }
  0x7e   : > { %v4431_v54 = vld [vmem:[%s4057_s7 + $0x34] sm:$0xf]  ;;  %2584 = vmatprep.mubr.bf16.mxu0 %v3723_v45  ;;  %v4433_v24 = vld [vmem:[#allocation2 + $0x58] sm:$0xff]  ;;  %v1035_v49 = vsel %vm4089_vm5, %v1030_v47, %v1034_v30  ;;  %v686_v56 = vshll.u32 %v3011_v35, 16  ;;  %v3029_v59 = vrot.slane %v4155_v8, 9  ;;  %v882_v62 = vrot.slane %v4161_v16, 5 }
  0x7f   : > { %987 = vst [vmem:[#allocation2 + $0xcc] sm:$0xf] %v4431_v54  ;;  %v1040_v60 = vrot.slane %v1039_v48, 4  ;;  %1208 = vst [vmem:[#allocation2 + $0x64] sm:$0xf] %v1035_v49  ;;  %v4443_v29 = vld [vmem:[%s4999_s1 + $0x230] sm:$0xff]   ;;  %v679_v61 = vsel %vm4089_vm5, %v674_v15, %v678_v52  ;;  %v1256_v17 = vsel %vm4070_vm4, %v3062_v34, %v1255_v38  ;;  %v1259_v20 = vsel %vm4070_vm4, %v1257_v51, %v1258_v42 }
  0x80   : > { %v885_v63 = vrot.slane %v3011_v35, 5  ;;  %v4449_v0 = vld [vmem:[%s4057_s7 + $0x38] sm:$0x1]  ;;  %v682_v2 = vrot.slane %v680_v55, 4  ;;  %v688_v46 = vrot.slane %v686_v56, 5  ;;  %v1047_v8 = vshrl.u32 %v4425_v43, 16 }
  0x81   : > { %830 = vst [vmem:[#allocation2 + $0xa0] sm:$0xf] %v679_v61  ;;  %v1050_v3 = vshll.u32 %v4425_v43, 16  ;;  %v3724_v4 = vld [vmem:[#allocation2 + $0x18] ss:$36 sps:$4 sm:$0xff]   ;;  %v1045_v5 = vsel %vm4089_vm5, %v1040_v60, %v1044_v50  ;;  %v883_v6 = vsel %vm4070_vm4, %v3029_v59, %v882_v62  ;;  %v884_v7 = vrot.slane %v882_v62, 4 }
  0x82   : > { %2585 = vmatmul.mubr.bf16.vlgmr.msra.gmra.mxu0 %v3721_v44  ;;  %v1056_v16 = vshll.u32 %v4431_v54, 16  ;;  %v3726_v10 = vld [vmem:[#allocation2 + $0x1c] ss:$36 sps:$4 sm:$0xff]   ;;  %1209 = vst [vmem:[#allocation2 + $0x88] sm:$0xf] %v1045_v5  ;;  %v683_v14 = vor.u32 %v682_v2, %v678_v52  ;;  %v1049_v18 = vrot.slane %v1047_v8, 4 }
  0x83   : > { %3495 = vmatpush3.bf16.msra.mxu0 %v4380_v39  ;;  %v1351_v19 = vld [vmem:[#allocation2 + $0x7c] sm:$0xff]  ;;  %942 = vst [vmem:[#allocation2 + $0xa4] sm:$0xf] %v883_v6  ;;  %v886_v28 = vsel %vm4070_vm4, %v884_v7, %v885_v63  ;;  %v1052_v23 = vrot.slane %v1050_v3, 5  ;;  %v4470_v30 = vld [vmem:[%s4999_s1 + $0x228] sm:$0xff]   ;;  %2681 = vmatprep.mubr.bf16.mxu1 %v3726_v10  ;;  %v1060_v35 = vshrl.u32 %v4431_v54, 16 }
  0x84   : > { %v3728_v13 = vld [vmem:[#allocation2 + $0x5c] ss:$36 sps:$4 sm:$0xff]   ;;  %v3082_v21 = vcombine.low %v4433_v24, %v1351_v19  ;;  %3496 = vmatprep.subr.bf16.mxu0 %v4443_v29  ;;  %v1058_v25 = vrot.slane %v1056_v16, 5  ;;  %1320 = vst [vmem:[#allocation2 + $0x68] sm:$0xf] %v1256_v17  ;;  %v684_v34 = vrot.slane %v683_v14, 4  ;;  %2682 = vmatmul.mubr.bf16.vlgmr.msra.gmra.mxu1 %v3724_v4 }
  0x85   : > { %v4473_v31 = vld [vmem:[%s4057_s7 + $0x3c] sm:$0xf]  ;;  %1321 = vst [vmem:[#allocation2 + $0x8c] sm:$0xf] %v1259_v20  ;;  %2592 = vmatprep.mubr.bf16.mxu0 %v3728_v13  ;;  %943 = vst [vmem:[#allocation2 + $0xc8] sm:$0xf] %v886_v28  ;;  %v1053_v15 = vor.u32 %v1052_v23, %v1049_v18  ;;  %3534 = vmatpush3.bf16.msra.mxu1 %v4380_v39 }
  0x86   : > { %v1066_v37 = vshll.u32 %v4449_v0, 16  ;;  %v691_v38 = vshrl.u32 %v4186_v41, 16  ;;  %v4479_v42 = vld [vmem:[%s4057_s7 + $0x40] sm:$0xf]  ;;  %988 = vst [vmem:[#allocation2 + $0xf0] sm:$0xf] %v4473_v31  ;;  %v689_v50 = vsel %vm4089_vm5, %v684_v34, %v688_v46  ;;  %3527 = vmatprep.subr.bf16.mxu1 %v4443_v29 }
  0x87   : > { %v3014_v44 = vld [vmem:[%s4057_s7 + $0x38] sm:$0x1]  ;;  %v694_v45 = vshll.u32 %v4186_v41, 16  ;;  %v700_v47 = vshll.u32 %v4193_v53, 16  ;;  %v704_v48 = vshrl.u32 %v4193_v53, 16  ;;  %3497 = vmatpush3.bf16.msra.mxu0 %v4443_v29  ;;  %v1062_v51 = vrot.slane %v1060_v35, 4 }
  0x88   : > { %989 = vst [vmem:[#allocation2 + $0x114] sm:$0xf] %v4479_v42  ;;  %v1068_v52 = vrot.slane %v1066_v37, 5  ;;  %v693_v24 = vrot.slane %v691_v38, 4  ;;  %831 = vst [vmem:[#allocation2 + $0xc4] sm:$0xf] %v689_v50  ;;  %3498 = vmatprep.subr.bf16.mxu0 %v4470_v30 }
  0x89   : > { %v1054_v49 = vrot.slane %v1053_v15, 4  ;;  %v696_v55 = vrot.slane %v694_v45, 5  ;;  %v702_v56 = vrot.slane %v700_v47, 5  ;;  %v706_v59 = vrot.slane %v704_v48, 4  ;;  %v4498_v63 = vld [vmem:[%s4999_s1 + $0x220] sm:$0xff]   ;;  %3535 = vmatpush3.bf16.msra.mxu1 %v4443_v29  ;;  %v4515_v19 = vld [vmem:[%s4999_s1 + $0x218] sm:$0xff]  }
  0x8a   : > { %v1063_v60 = vor.u32 %v1062_v51, %v1058_v25  ;;  %v710_v39 = vshll.u32 %v3014_v44, 16  ;;  %v3030_v61 = vrot.slane %v4186_v41, 9  ;;  %v889_v62 = vrot.slane %v4193_v53, 5  ;;  %v3730_v2 = vld [vmem:[#allocation2 + $0x64] ss:$36 sps:$4 sm:$0xff]   ;;  %2593 = vmatmul.mubr.bf16.gmra.mxu0 %v3082_v21  ;;  %3528 = vmatprep.subr.bf16.mxu1 %v4470_v30 }
  0x8b   : > { %v3732_v46 = vld [vmem:[#allocation2 + $0x60] ss:$36 sps:$4 sm:$0xff]   ;;  %v1059_v8 = vsel %vm4089_vm5, %v1054_v49, %v1058_v25  ;;  %v697_v3 = vor.u32 %v696_v55, %v693_v24  ;;  %v707_v4 = vor.u32 %v706_v59, %v702_v56  ;;  %v892_v5 = vrot.slane %v3014_v44, 5  ;;  %3499 = vmatpush3.bf16.msra.mxu0 %v4470_v30  ;;  %v4510_v10 = vld [vmem:[%s4057_s7 + $0x48] sm:$0xf]  ;;  %2689 = vmatprep.mubr.bf16.mxu1 %v3730_v2  ;;  %v4542_v44 = vld [vmem:[%s4999_s1 + $0x210] sm:$0xff]  }
  0x8c   : > { %v4503_v6 = vld [vmem:[%s4057_s7 + $0x44] sm:$0x1]  ;;  %v1064_v41 = vrot.slane %v1063_v60, 4  ;;  %1210 = vst [vmem:[#allocation2 + $0xac] sm:$0xf] %v1059_v8  ;;  %v712_v53 = vrot.slane %v710_v39, 5  ;;  %v890_v7 = vsel %vm4070_vm4, %v3030_v61, %v889_v62  ;;  %3500 = vmatprep.subr.bf16.mxu0 %v4498_v63  ;;  %2690 = vmatmul.mubr.bf16.gmra.mxu1 %v3732_v46 }
  0x8d   : > { %v891_v16 = vrot.slane %v889_v62, 4  ;;  %v698_v29 = vrot.slane %v697_v3, 4  ;;  %v708_v13 = vrot.slane %v707_v4, 4  ;;  %944 = vst [vmem:[#allocation2 + $0xec] sm:$0xf] %v890_v7  ;;  %v1071_v14 = vshrl.u32 %v4473_v31, 16  ;;  %3536 = vmatpush3.bf16.msra.mxu1 %v4470_v30 }
  0x8e   : > { %v1074_v18 = vshll.u32 %v4473_v31, 16  ;;  %v4521_v17 = vld [vmem:[%s4057_s7 + $0x4c] sm:$0xf]  ;;  %990 = vst [vmem:[#allocation2 + $0x138] sm:$0xf] %v4510_v10  ;;  %v1356_v20 = vld [vmem:[#allocation2 + $0xa0] sm:$0xff]  ;;  %v1069_v21 = vsel %vm4089_vm5, %v1064_v41, %v1068_v52  ;;  %3529 = vmatprep.subr.bf16.mxu1 %v4498_v63 }
  0x8f   : > { %v893_v28 = vsel %vm4070_vm4, %v891_v16, %v892_v5  ;;  %v1080_v23 = vshll.u32 %v4479_v42, 16  ;;  %v1084_v25 = vshrl.u32 %v4479_v42, 16  ;;  %991 = vst [vmem:[#allocation2 + $0x15c] sm:$0xf] %v4521_v17  ;;  %1211 = vst [vmem:[#allocation2 + $0xd0] sm:$0xf] %v1069_v21  ;;  %v703_v34 = vsel %vm4089_vm5, %v698_v29, %v702_v56  ;;  %3501 = vmatpush3.bf16.msra.mxu0 %v4498_v63 }
  0x90   : > { %v713_v35 = vsel %vm4089_vm5, %v708_v13, %v712_v53  ;;  %945 = vst [vmem:[#allocation2 + $0x110] sm:$0xf] %v893_v28  ;;  %v1073_v37 = vrot.slane %v1071_v14, 4  ;;  %v1076_v38 = vrot.slane %v1074_v18, 5  ;;  %v4537_v15 = vld [vmem:[%s4057_s7 + $0x44] sm:$0x1]  ;;  %3502 = vmatprep.subr.bf16.mxu0 %v4515_v19 }
  0x91   : > { %v1361_v45 = vld [vmem:[#allocation2 + $0xc4] sm:$0xff]  ;;  %832 = vst [vmem:[#allocation2 + $0xe8] sm:$0xf] %v703_v34  ;;  %833 = vst [vmem:[#allocation2 + $0x10c] sm:$0xf] %v713_v35  ;;  %v1082_v48 = vrot.slane %v1080_v23, 5  ;;  %3537 = vmatpush3.bf16.msra.mxu1 %v4498_v63 }
  0x92   : > { %v3734_v47 = vld [vmem:[#allocation2 + $0xa4] ss:$36 sps:$4 sm:$0xff]   ;;  %v1086_v50 = vrot.slane %v1084_v25, 4  ;;  %v1090_v51 = vshll.u32 %v4503_v6, 16  ;;  %v3091_v52 = vcombine.low %v1356_v20, %v1361_v45  ;;  %v1077_v24 = vor.u32 %v1076_v38, %v1073_v37  ;;  %v4552_v56 = vld [vmem:[%s4057_s7 + $0x54] sm:$0xf]  ;;  %3530 = vmatprep.subr.bf16.mxu1 %v4515_v19 }
  0x93   : > { %v715_v49 = vshrl.u32 %v4221_v26, 16  ;;  %v718_v55 = vshll.u32 %v4221_v26, 16  ;;  %v4555_v30 = vld [vmem:[%s4057_s7 + $0x58] sm:$0xf]  ;;  %2600 = vmatprep.mubr.bf16.mxu0 %v3734_v47  ;;  %v724_v39 = vshll.u32 %v4228_v36, 16  ;;  %v728_v61 = vshrl.u32 %v4228_v36, 16  ;;  %3503 = vmatpush3.bf16.msra.mxu0 %v4515_v19 }
  0x94   : > { %v1087_v59 = vor.u32 %v1086_v50, %v1082_v48  ;;  %v1092_v60 = vrot.slane %v1090_v51, 5  ;;  %992 = vst [vmem:[#allocation2 + $0x180] sm:$0xf] %v4552_v56  ;;  %993 = vst [vmem:[#allocation2 + $0x1a4] sm:$0xf] %v4555_v30  ;;  %2601 = vmatmul.mubr.bf16.gmra.mxu0 %v3091_v52  ;;  %v1078_v62 = vrot.slane %v1077_v24, 4  ;;  %3504 = vmatprep.subr.bf16.mxu0 %v4542_v44 }
  0x95   : > { %v717_v2 = vrot.slane %v715_v49, 4  ;;  %v720_v46 = vrot.slane %v718_v55, 5  ;;  %v734_v8 = vshll.u32 %v4537_v15, 16  ;;  %v726_v4 = vrot.slane %v724_v39, 5  ;;  %v4569_v13 = vld [vmem:[%s4057_s7 + $0x50] sm:$0x1]  ;;  %3538 = vmatpush3.bf16.msra.mxu1 %v4515_v19 }
  0x96   : > { %v1088_v3 = vrot.slane %v1087_v59, 4  ;;  %v730_v5 = vrot.slane %v728_v61, 4  ;;  %v3031_v41 = vrot.slane %v4221_v26, 9  ;;  %v1083_v53 = vsel %vm4089_vm5, %v1078_v62, %v1082_v48  ;;  %v4576_v63 = vld [vmem:[%s4999_s1 + $0x208] sm:$0xff]   ;;  %v4596_v24 = vld [vmem:[%s4057_s7 + $0x50] sm:$0x1]  ;;  %3531 = vmatprep.subr.bf16.mxu1 %v4542_v44 }
  0x97   : > { %v721_v7 = vor.u32 %v720_v46, %v717_v2  ;;  %v736_v16 = vrot.slane %v734_v8, 5  ;;  %v896_v29 = vrot.slane %v4228_v36, 5  ;;  %v3736_v26 = vld [vmem:[#allocation2 + $0xac] ss:$36 sps:$4 sm:$0xff]   ;;  %1212 = vst [vmem:[#allocation2 + $0xf4] sm:$0xf] %v1083_v53  ;;  %3505 = vmatpush3.bf16.msra.mxu0 %v4542_v44 }
  0x98   : > { %v3738_v14 = vld [vmem:[#allocation2 + $0xa8] ss:$36 sps:$4 sm:$0xff]   ;;  %v1093_v18 = vsel %vm4089_vm5, %v1088_v3, %v1092_v60  ;;  %v731_v20 = vor.u32 %v730_v5, %v726_v4  ;;  %v899_v36 = vrot.slane %v4537_v15, 5  ;;  %2697 = vmatprep.mubr.bf16.mxu1 %v3736_v26  ;;  %v1095_v45 = vshrl.u32 %v4510_v10, 16  ;;  %v4587_v15 = vld [vmem:[%s4057_s7 + $0x60] sm:$0xf]  ;;  %3506 = vmatprep.subr.bf16.mxu0 %v4576_v63 }
  0x99   : > { %v1366_v21 = vld [vmem:[#allocation2 + $0xe8] sm:$0xff]  ;;  %1213 = vst [vmem:[#allocation2 + $0x118] sm:$0xf] %v1093_v18  ;;  %v722_v25 = vrot.slane %v721_v7, 4  ;;  %v897_v34 = vsel %vm4070_vm4, %v3031_v41, %v896_v29  ;;  %v898_v35 = vrot.slane %v896_v29, 4  ;;  %v1098_v47 = vshll.u32 %v4510_v10, 16  ;;  %2698 = vmatmul.mubr.bf16.gmra.mxu1 %v3738_v14 }
  0x9a   : > { %v1371_v28 = vld [vmem:[#allocation2 + $0x10c] sm:$0xff]  ;;  %v732_v38 = vrot.slane %v731_v20, 4  ;;  %946 = vst [vmem:[#allocation2 + $0x134] sm:$0xf] %v897_v34  ;;  %v1104_v51 = vshll.u32 %v4521_v17, 16  ;;  %v1108_v52 = vshrl.u32 %v4521_v17, 16  ;;  %3539 = vmatpush3.bf16.msra.mxu1 %v4542_v44 }
  0x9b   : > { %v3740_v23 = vld [vmem:[#allocation2 + $0xec] ss:$36 sps:$4 sm:$0xff]   ;;  %v3100_v37 = vcombine.low %v1366_v21, %v1371_v28  ;;  %v727_v48 = vsel %vm4089_vm5, %v722_v25, %v726_v4  ;;  %v900_v50 = vsel %vm4070_vm4, %v898_v35, %v899_v36  ;;  %v4599_v49 = vld [vmem:[%s4057_s7 + $0x64] sm:$0xf]  ;;  %994 = vst [vmem:[#allocation2 + $0x1c8] sm:$0xf] %v4587_v15  ;;  %3532 = vmatprep.subr.bf16.mxu1 %v4576_v63 }
  0x9c   : > { %2608 = vmatprep.mubr.bf16.mxu0 %v3740_v23  ;;  %v737_v19 = vsel %vm4089_vm5, %v732_v38, %v736_v16  ;;  %834 = vst [vmem:[#allocation2 + $0x130] sm:$0xf] %v727_v48  ;;  %947 = vst [vmem:[#allocation2 + $0x158] sm:$0xf] %v900_v50  ;;  %v1097_v55 = vrot.slane %v1095_v45, 4  ;;  %v1100_v59 = vrot.slane %v1098_v47, 5  ;;  %3507 = vmatpush3.bf16.msra.mxu0 %v4576_v63 }
  0x9d   : > { %v1114_v60 = vshll.u32 %v4569_v13, 16  ;;  %995 = vst [vmem:[#allocation2 + $0x1ec] sm:$0xf] %v4599_v49  ;;  %v4611_v39 = vld [vmem:[%s4999_s1 + $0x200] sm:$0xff]   ;;  %2609 = vmatmul.mubr.bf16.gmra.mxu0 %v3100_v37  ;;  %835 = vst [vmem:[#allocation2 + $0x154] sm:$0xf] %v737_v19 }
  0x9e   : > { %v1106_v61 = vrot.slane %v1104_v51, 5  ;;  %v1110_v62 = vrot.slane %v1108_v52, 4  ;;  %v739_v2 = vshrl.u32 %v4257_v12, 16  ;;  %v742_v46 = vshll.u32 %v4257_v12, 16  ;;  %v4622_v29 = vld [vmem:[%s4057_s7 + $0x6c] sm:$0xf]  ;;  %3508 = vmatprep.subr.bf16.mxu0 %v4611_v39  ;;  %3540 = vmatpush3.bf16.msra.mxu1 %v4576_v63 }
  0x9f   : > { %v1101_v8 = vor.u32 %v1100_v59, %v1097_v55  ;;  %v1116_v3 = vrot.slane %v1114_v60, 5  ;;  %v748_v4 = vshll.u32 %v4264_v22, 16  ;;  %v752_v5 = vshrl.u32 %v4264_v22, 16  ;;  %v3744_v14 = vld [vmem:[#allocation2 + $0xf0] ss:$36 sps:$4 sm:$0xff]   ;;  %3533 = vmatprep.subr.bf16.mxu1 %v4611_v39 }
  0xa0   : > { %v1111_v41 = vor.u32 %v1110_v62, %v1106_v61  ;;  %v741_v53 = vrot.slane %v739_v2, 4  ;;  %v744_v7 = vrot.slane %v742_v46, 5  ;;  %v758_v16 = vshll.u32 %v4596_v24, 16  ;;  %v3742_v26 = vld [vmem:[#allocation2 + $0xf4] ss:$36 sps:$4 sm:$0xff]   ;;  %3509 = vmatpush3.bf16.msra.mxu0 %v4611_v39 }
  0xa1   : > { %v1102_v18 = vrot.slane %v1101_v8, 4  ;;  %996 = vst [vmem:[#allocation2 + $0x210] sm:$0xf] %v4622_v29  ;;  %v750_v36 = vrot.slane %v748_v4, 5  ;;  %v754_v21 = vrot.slane %v752_v5, 4  ;;  %2705 = vmatprep.mubr.bf16.mxu1 %v3742_v26  ;;  %v3032_v34 = vrot.slane %v4257_v12, 9 }
  0xa2   : > { %v1112_v20 = vrot.slane %v1111_v41, 4  ;;  %v745_v44 = vor.u32 %v744_v7, %v741_v53  ;;  %v4627_v28 = vld [vmem:[%s4057_s7 + $0x70] sm:$0xf]  ;;  %v760_v25 = vrot.slane %v758_v16, 5  ;;  %v903_v35 = vrot.slane %v4264_v22, 5  ;;  %2706 = vmatmul.mubr.bf16.gmra.mxu1 %v3744_v14 }
  0xa3   : > { %v1107_v23 = vsel %vm4089_vm5, %v1102_v18, %v1106_v61  ;;  %v4635_v37 = vld [vmem:[%s4057_s7 + $0x5c] sm:$0x1]  ;;  %997 = vst [vmem:[#allocation2 + $0x234] sm:$0xf] %v4627_v28  ;;  %v1376_v38 = vld [vmem:[#allocation2 + $0x130] sm:$0xff]  ;;  %v755_v48 = vor.u32 %v754_v21, %v750_v36  ;;  %v906_v50 = vrot.slane %v4596_v24, 5  ;;  %3541 = vmatpush3.bf16.msra.mxu1 %v4611_v39 }
  0xa4   : > { %v1117_v45 = vsel %vm4089_vm5, %v1112_v20, %v1116_v3  ;;  %1214 = vst [vmem:[#allocation2 + $0x13c] sm:$0xf] %v1107_v23  ;;  %v746_v47 = vrot.slane %v745_v44, 4  ;;  %v1381_v12 = vld [vmem:[#allocation2 + $0x154] sm:$0xff]  ;;  %v904_v63 = vsel %vm4070_vm4, %v3032_v34, %v903_v35  ;;  %v905_v51 = vrot.slane %v903_v35, 4 }
  0xa5   : > { %v3746_v22 = vld [vmem:[#allocation2 + $0x134] ss:$36 sps:$4 sm:$0xff]   ;;  %1215 = vst [vmem:[#allocation2 + $0x160] sm:$0xf] %v1117_v45  ;;  %v1119_v52 = vshrl.u32 %v4552_v56, 16  ;;  %v1122_v19 = vshll.u32 %v4552_v56, 16  ;;  %v3109_v55 = vcombine.low %v1376_v38, %v1381_v12 }
  0xa6   : > { %v751_v59 = vsel %vm4089_vm5, %v746_v47, %v750_v36  ;;  %v756_v24 = vrot.slane %v755_v48, 4  ;;  %948 = vst [vmem:[#allocation2 + $0x17c] sm:$0xf] %v904_v63  ;;  %v1128_v60 = vshll.u32 %v4555_v30, 16  ;;  %2616 = vmatprep.mubr.bf16.mxu0 %v3746_v22  ;;  %v907_v61 = vsel %vm4070_vm4, %v905_v51, %v906_v50  ;;  %v3023_v21 = vld [vmem:[%s4057_s7 + $0x5c] sm:$0x1] }
  0xa7   : > { %836 = vst [vmem:[#allocation2 + $0x178] sm:$0xf] %v751_v59  ;;  %v1121_v62 = vrot.slane %v1119_v52, 4  ;;  %v1124_v2 = vrot.slane %v1122_v19, 5  ;;  %v1132_v46 = vshrl.u32 %v4555_v30, 16  ;;  %2617 = vmatmul.mubr.bf16.gmra.mxu0 %v3109_v55  ;;  %v1138_v4 = vshll.u32 %v4635_v37, 16 }
  0xa8   : > { %v761_v8 = vsel %vm4089_vm5, %v756_v24, %v760_v25  ;;  %949 = vst [vmem:[#allocation2 + $0x1a0] sm:$0xf] %v907_v61  ;;  %v1130_v3 = vrot.slane %v1128_v60, 5  ;;  %v3066_v5 = vrot.slane %v4552_v56, 9  ;;  %v1283_v7 = vrot.slane %v4555_v30, 5 }
  0xa9   : > { %837 = vst [vmem:[#allocation2 + $0x19c] sm:$0xf] %v761_v8  ;;  %v1125_v41 = vor.u32 %v1124_v2, %v1121_v62  ;;  %v1134_v53 = vrot.slane %v1132_v46, 4  ;;  %v1286_v16 = vrot.slane %v4635_v37, 5  ;;  %v1140_v26 = vrot.slane %v1138_v4, 5 }
  0xaa   : > { %v763_v39 = vshrl.u32 %v4292_v11, 16  ;;  %v766_v14 = vshll.u32 %v4292_v11, 16  ;;  %v772_v18 = vshll.u32 %v4301_v9, 16  ;;  %v4664_v36 = vrot.slane %v1283_v7, 4  ;;  %v3750_v25 = vld [vmem:[#allocation2 + $0x138] ss:$36 sps:$4 sm:$0xff]  }
  0xab   : > { %v1126_v20 = vrot.slane %v1125_v41, 4  ;;  %v1135_v44 = vor.u32 %v1134_v53, %v1130_v3  ;;  %v776_v56 = vshrl.u32 %v4301_v9, 16  ;;  %v1284_v30 = vsel %vm4070_vm4, %v3066_v5, %v1283_v7  ;;  %v4677_v55 = vld [vmem:[%s4057_s7 + $0x68] sm:$0x1] }
  0xac   : > { %v3748_v23 = vld [vmem:[#allocation2 + $0x13c] ss:$36 sps:$4 sm:$0xff]   ;;  %v765_v34 = vrot.slane %v763_v39, 4  ;;  %v768_v45 = vrot.slane %v766_v14, 5  ;;  %v774_v47 = vrot.slane %v772_v18, 5  ;;  %v782_v12 = vshll.u32 %v3023_v21, 16 }
  0xad   : > { %v1131_v35 = vsel %vm4089_vm5, %v1126_v20, %v1130_v3  ;;  %v1136_v38 = vrot.slane %v1135_v44, 4  ;;  %1328 = vst [vmem:[#allocation2 + $0x188] sm:$0xf] %v1284_v30  ;;  %2713 = vmatprep.mubr.bf16.mxu1 %v3748_v23  ;;  %v778_v50 = vrot.slane %v776_v56, 4  ;;  %v3033_v22 = vrot.slane %v4292_v11, 9 }
  0xae   : > { %v1386_v48 = vld [vmem:[#allocation2 + $0x178] sm:$0xff]  ;;  %1216 = vst [vmem:[#allocation2 + $0x184] sm:$0xf] %v1131_v35  ;;  %v910_v63 = vrot.slane %v4301_v9, 5  ;;  %2714 = vmatmul.mubr.bf16.gmra.mxu1 %v3750_v25  ;;  %v769_v52 = vor.u32 %v768_v45, %v765_v34  ;;  %v913_v19 = vrot.slane %v3023_v21, 5  ;;  %v1143_v59 = vshrl.u32 %v4587_v15, 16 }
  0xaf   : > { %v1141_v51 = vsel %vm4089_vm5, %v1136_v38, %v1140_v26  ;;  %v3752_v60 = vld [vmem:[#allocation2 + $0x17c] ss:$36 sps:$4 sm:$0xff]   ;;  %v779_v61 = vor.u32 %v778_v50, %v774_v47  ;;  %v784_v62 = vrot.slane %v782_v12, 5  ;;  %v1146_v3 = vshll.u32 %v4587_v15, 16  ;;  %v3026_v14 = vld [vmem:[%s4057_s7 + $0x68] sm:$0x1] }
  0xb0   : > { %v1391_v24 = vld [vmem:[#allocation2 + $0x19c] sm:$0xff]  ;;  %1217 = vst [vmem:[#allocation2 + $0x1a8] sm:$0xf] %v1141_v51  ;;  %v911_v11 = vsel %vm4070_vm4, %v3033_v22, %v910_v63  ;;  %v912_v2 = vrot.slane %v910_v63, 4  ;;  %v770_v46 = vrot.slane %v769_v52, 4  ;;  %v1145_v8 = vrot.slane %v1143_v59, 4  ;;  %2624 = vmatprep.mubr.bf16.mxu0 %v3752_v60 }
  0xb1   : > { %v3118_v9 = vcombine.low %v1386_v48, %v1391_v24  ;;  %950 = vst [vmem:[#allocation2 + $0x1c4] sm:$0xf] %v911_v11  ;;  %v780_v4 = vrot.slane %v779_v61, 4  ;;  %v1152_v41 = vshll.u32 %v4599_v49, 16  ;;  %v1156_v53 = vshrl.u32 %v4599_v49, 16 }
  0xb2   : > { %v914_v5 = vsel %vm4070_vm4, %v912_v2, %v913_v19  ;;  %v775_v7 = vsel %vm4089_vm5, %v770_v46, %v774_v47  ;;  %v1148_v26 = vrot.slane %v1146_v3, 5  ;;  %v1162_v39 = vshll.u32 %v4677_v55, 16  ;;  %v3756_v50 = vld [vmem:[#allocation2 + $0x180] ss:$36 sps:$4 sm:$0xff]   ;;  %v4711_v46 = vld [vmem:[%s4057_s7 + $0x74] sm:$0x1] }
  0xb3   : > { %2625 = vmatmul.mubr.bf16.gmra.mxu0 %v3118_v9  ;;  %951 = vst [vmem:[#allocation2 + $0x1e8] sm:$0xf] %v914_v5  ;;  %v787_v18 = vshrl.u32 %v4332_v57, 16  ;;  %v785_v20 = vsel %vm4089_vm5, %v780_v4, %v784_v62  ;;  %838 = vst [vmem:[#allocation2 + $0x1c0] sm:$0xf] %v775_v7  ;;  %v1154_v44 = vrot.slane %v1152_v41, 5  ;;  %v1287_v22 = vsel %vm4070_vm4, %v4664_v36, %v1286_v16 }
  0xb4   : > { %v1158_v21 = vrot.slane %v1156_v53, 4  ;;  %v790_v56 = vshll.u32 %v4332_v57, 16  ;;  %839 = vst [vmem:[#allocation2 + $0x1e4] sm:$0xf] %v785_v20  ;;  %v1149_v23 = vor.u32 %v1148_v26, %v1145_v8  ;;  %v1164_v25 = vrot.slane %v1162_v39, 5  ;;  %s170_s7 = sand.u32 1, %s3846_s10  }
  0xb5   : > { %v789_v34 = vrot.slane %v787_v18, 4  ;;  %v796_v30 = vshll.u32 %v4338_v1, 16  ;;  %v800_v45 = vshrl.u32 %v4338_v1, 16  ;;  %v806_v47 = vshll.u32 %v3026_v14, 16  ;;  %1329 = vst [vmem:[#allocation2 + $0x1ac] sm:$0xf] %v1287_v22 }
  0xb6   : > { %v1159_v35 = vor.u32 %v1158_v21, %v1154_v44  ;;  %v792_v38 = vrot.slane %v790_v56, 5  ;;  %v1150_v12 = vrot.slane %v1149_v23, 4  ;;  %v3034_v60 = vrot.slane %v4332_v57, 9  ;;  %s2988_s30 = sshll.u32 %s170_s7, 7  ;;  %s4947_s28 = scalar_lea.sflag [#allocation4], %s170_s7 }
  0xb7   : > { %v3754_v48 = vld [vmem:[#allocation2 + $0x184] ss:$36 sps:$4 sm:$0xff]   ;;  %v798_v52 = vrot.slane %v796_v30, 5  ;;  %v802_v19 = vrot.slane %v800_v45, 4  ;;  %v808_v24 = vrot.slane %v806_v47, 5  ;;  %v917_v61 = vrot.slane %v4338_v1, 5 }
  0xb8   : > { %v1160_v63 = vrot.slane %v1159_v35, 4  ;;  %v793_v51 = vor.u32 %v792_v38, %v789_v34  ;;  %2721 = vmatprep.mubr.bf16.mxu1 %v3754_v48  ;;  %v1155_v59 = vsel %vm4089_vm5, %v1150_v12, %v1154_v44  ;;  %v920_v62 = vrot.slane %v3026_v14, 5  ;;  %s4884_s17 = scalar_lea.vmem [#allocation3], %s2988_s30 }
  0xb9   : > { %2722 = vmatmul.mubr.bf16.gmra.mxu1 %v3756_v50  ;;  %1218 = vst [vmem:[#allocation2 + $0x1cc] sm:$0xf] %v1155_v59  ;;  %v803_v36 = vor.u32 %v802_v19, %v798_v52  ;;  %v918_v2 = vsel %vm4070_vm4, %v3034_v60, %v917_v61  ;;  %v919_v9 = vrot.slane %v917_v61, 4  ;;  %v1167_v57 = vshrl.u32 %v4622_v29, 16  ;;  %s2877_s18 = sshll.u32 %s4884_s17, 4  ;;  %s4941_s18 = int_to_ptr.vmem [resolvable:$true] %s2877_s18 }
  0xba   : > { %v1165_v37 = vsel %vm4089_vm5, %v1160_v63, %v1164_v25  ;;  %v794_v16 = vrot.slane %v793_v51, 4  ;;  %v1396_v11 = vld [vmem:[#allocation2 + $0x1c0] sm:$0xff]  ;;  %v1170_v1 = vshll.u32 %v4622_v29, 16  ;;  %952 = vst [vmem:[#allocation2 + $0x20c] sm:$0xf] %v918_v2  ;;  %v1176_v41 = vshll.u32 %v4627_v28, 16  ;;  %p3785_p2 = scmp.lt.s32.totalorder %s4941_s18, %s3783_s4 }
  0xbb   : > { %1219 = vst [vmem:[#allocation2 + $0x1f0] sm:$0xf] %v1165_v37  ;;  %v1401_v8 = vld [vmem:[#allocation2 + $0x1e4] sm:$0xff]  ;;  %v804_v5 = vrot.slane %v803_v36, 4  ;;  %v1180_v53 = vshrl.u32 %v4627_v28, 16  ;;  %v921_v26 = vsel %vm4070_vm4, %v919_v9, %v920_v62  ;;  %v1169_v39 = vrot.slane %v1167_v57, 4 }
  0xbc   : > { %v3758_v3 = vld [vmem:[#allocation2 + $0x1c4] ss:$36 sps:$4 sm:$0xff]   ;;  %v799_v4 = vsel %vm4089_vm5, %v794_v16, %v798_v52  ;;  %v3127_v7 = vcombine.low %v1396_v11, %v1401_v8  ;;  %v1172_v14 = vrot.slane %v1170_v1, 5  ;;  %953 = vst [vmem:[#allocation2 + $0x230] sm:$0xf] %v921_v26  ;;  %v1178_v20 = vrot.slane %v1176_v41, 5 }
  0xbd   : > { %840 = vst [vmem:[#allocation2 + $0x208] sm:$0xf] %v799_v4  ;;  %2632 = vmatprep.mubr.bf16.mxu0 %v3758_v3  ;;  %v809_v18 = vsel %vm4089_vm5, %v804_v5, %v808_v24  ;;  %v1182_v44 = vrot.slane %v1180_v53, 4  ;;  %v1186_v21 = vshll.u32 %v4711_v46, 16  ;;  %v3061_v23 = vrot.slane %v4362_v27, 9  ;;  %s3778_s29 = scalar_lea.vmem %s4941_s18, 2048 }
  0xbe   : > { %2633 = vmatmul.mubr.bf16.gmra.mxu0 %v3127_v7  ;;  %841 = vst [vmem:[#allocation2 + $0x22c] sm:$0xf] %v809_v18  ;;  %v1173_v56 = vor.u32 %v1172_v14, %v1169_v39  ;;  %v1248_v25 = vrot.slane %v4366_v32, 5  ;;  %v1251_v34 = vrot.slane %v4369_v33, 5  ;;  %v3065_v38 = vrot.slane %v4510_v10, 9  ;;  %p3779_p13 = scmp.ne.s32.totalorder %s4941_s18, %s3778_s29  ;;  %p3786_p4 = scmp.lt.s32.totalorder %s3784_s5, %s3778_s29 }
  0xbf   : > { %v1183_v30 = vor.u32 %v1182_v44, %v1178_v20  ;;  %v1188_v35 = vrot.slane %v1186_v21, 5  ;;  %v1276_v45 = vrot.slane %v4521_v17, 5  ;;  %v1279_v12 = vrot.slane %v4569_v13, 5  ;;  %v3762_v63 = vld [vmem:[#allocation2 + $0x1c8] ss:$36 sps:$4 sm:$0xff]  }
  0xc0   : > { %v1174_v47 = vrot.slane %v1173_v56, 4  ;;  %v1249_v48 = vsel %vm4070_vm4, %v3061_v23, %v1248_v25  ;;  %v1250_v50 = vrot.slane %v1248_v25, 4  ;;  %v3063_v51 = vrot.slane %v4425_v43, 9  ;;  %v3768_v4 = vld [vmem:[#allocation2 + $0x210] ss:$36 sps:$4 sm:$0xff]   ;;  %p3780_p0 = pnand %p3779_p13, %p3941_p3  ;;  %p3787_p5 = por %p3786_p4, %p3785_p2 }
  0xc1   : > { %v1184_v27 = vrot.slane %v1183_v30, 4  ;;  %1318 = vst [vmem:[#allocation2 + $0x20] sm:$0xf] %v1249_v48  ;;  %v1277_v32 = vsel %vm4070_vm4, %v3065_v38, %v1276_v45  ;;  %v1278_v17 = vrot.slane %v1276_v45, 4  ;;  %v1262_v19 = vrot.slane %v4431_v54, 5 }
  0xc2   : > { %v3760_v22 = vld [vmem:[#allocation2 + $0x1cc] ss:$36 sps:$4 sm:$0xff]   ;;  %v1179_v33 = vsel %vm4089_vm5, %v1174_v47, %v1178_v20  ;;  %v1252_v10 = vsel %vm4070_vm4, %v1250_v50, %v1251_v34  ;;  %1326 = vst [vmem:[#allocation2 + $0x140] sm:$0xf] %v1277_v32  ;;  %v1265_v59 = vrot.slane %v4449_v0, 5  ;;  %v3067_v24 = vrot.slane %v4587_v15, 9  ;;  %p3781_p1 = pneg %p3780_p0 }
  0xc3   : > { %2729 = vmatprep.mubr.bf16.mxu1 %v3760_v22  ;;  %v1189_v13 = vsel %vm4089_vm5, %v1184_v27, %v1188_v35  ;;  %1220 = vst [vmem:[#allocation2 + $0x214] sm:$0xf] %v1179_v33  ;;  %1319 = vst [vmem:[#allocation2 + $0x44] sm:$0xf] %v1252_v10  ;;  %v1280_v60 = vsel %vm4070_vm4, %v1278_v17, %v1279_v12  ;;  %v1290_v43 = vrot.slane %v4599_v49, 5  ;;  %v1293_v61 = vrot.slane %v4677_v55, 5 }
  0xc4   : > { %v1406_v52 = vld [vmem:[#allocation2 + $0x208] sm:$0xff]  ;;  %2730 = vmatmul.mubr.bf16.gmra.mxu1 %v3762_v63  ;;  %1221 = vst [vmem:[#allocation2 + $0x238] sm:$0xf] %v1189_v13  ;;  %v3064_v58 = vrot.slane %v4473_v31, 9  ;;  %1327 = vst [vmem:[#allocation2 + $0x164] sm:$0xf] %v1280_v60  ;;  %v1263_v54 = vsel %vm4070_vm4, %v3063_v51, %v1262_v19  ;;  %p3788_p6 = pnand %p3787_p5, %p3781_p1 }
  0xc5   : > { %v1411_v37 = vld [vmem:[#allocation2 + $0x22c] sm:$0xff]  ;;  %v1264_v0 = vrot.slane %v1262_v19, 4  ;;  %v1269_v15 = vrot.slane %v4479_v42, 5  ;;  %v1272_v36 = vrot.slane %v4503_v6, 5  ;;  %1322 = vst [vmem:[#allocation2 + $0xb0] sm:$0xf] %v1263_v54  ;;  %v1291_v49 = vsel %vm4070_vm4, %v3067_v24, %v1290_v43 }
  0xc6   : > { %v3764_v16 = vld [vmem:[#allocation2 + $0x20c] ss:$36 sps:$4 sm:$0xff]   ;;  %v3136_v62 = vcombine.low %v1406_v52, %v1411_v37  ;;  %v1292_v11 = vrot.slane %v1290_v43, 4  ;;  %v3068_v55 = vrot.slane %v4622_v29, 9  ;;  %1330 = vst [vmem:[#allocation2 + $0x1d0] sm:$0xf] %v1291_v49 }
  0xc7   : > { %2640 = vmatprep.mubr.bf16.mxu0 %v3764_v16  ;;  %v1266_v31 = vsel %vm4070_vm4, %v1264_v0, %v1265_v59  ;;  %v1270_v2 = vsel %vm4070_vm4, %v3064_v58, %v1269_v15  ;;  %v1271_v9 = vrot.slane %v1269_v15, 4  ;;  %v1297_v42 = vrot.slane %v4627_v28, 5  ;;  %v3772_v53 = vld [vmem:[#allocation2 + $0x68] ss:$36 sps:$4 sm:$0xff]  }
  0xc8   : > { %2641 = vmatmul.mubr.bf16.gmra.mxu0 %v3136_v62  ;;  %1323 = vst [vmem:[#allocation2 + $0xd4] sm:$0xf] %v1266_v31  ;;  %v1294_v6 = vsel %vm4070_vm4, %v1292_v11, %v1293_v61  ;;  %1324 = vst [vmem:[#allocation2 + $0xf8] sm:$0xf] %v1270_v2  ;;  %v1300_v57 = vrot.slane %v4711_v46, 5 }
  0xc9   : > { %1331 = vst [vmem:[#allocation2 + $0x1f4] sm:$0xf] %v1294_v6  ;;  %v1273_v29 = vsel %vm4070_vm4, %v1271_v9, %v1272_v36  ;;  %v1298_v1 = vsel %vm4070_vm4, %v3068_v55, %v1297_v42  ;;  %v1299_v8 = vrot.slane %v1297_v42, 4  ;;  %v3773_v7 = vld [vmem:[#allocation2 + $0x188] ss:$36 sps:$4 sm:$0xff]  }
  0xca   : > { %v3770_v3 = vld [vmem:[#allocation2 + $0x20] ss:$36 sps:$4 sm:$0xff]   ;;  %1325 = vst [vmem:[#allocation2 + $0x11c] sm:$0xf] %v1273_v29  ;;  %1332 = vst [vmem:[#allocation2 + $0x218] sm:$0xf] %v1298_v1 }
  0xcb   : > { %v3766_v28 = vld [vmem:[#allocation2 + $0x214] ss:$36 sps:$4 sm:$0xff]   ;;  %v1301_v5 = vsel %vm4070_vm4, %v1299_v8, %v1300_v57  ;;  %3510 = vmatprep.mubr.bf16.mxu0 %v3770_v3  ;;  %v3771_v41 = vld [vmem:[#allocation2 + $0x140] ss:$36 sps:$4 sm:$0xff]  }
  0xcc   : > { %1333 = vst [vmem:[#allocation2 + $0x23c] sm:$0xf] %v1301_v5  ;;  %2737 = vmatprep.mubr.bf16.mxu1 %v3766_v28 }
  0xcd   : > { %2738 = vmatmul.mubr.bf16.gmra.mxu1 %v3768_v4 }
  0xce   : > { %3518 = vmatprep.mubr.bf16.mxu1 %v3771_v41 }
  0xcf   : > { %v3774_v46 = vld [vmem:[#allocation2 + $0xb0] ss:$36 sps:$4 sm:$0xff]  }
  0xd0   : > { %3511 = vmatmul.mubr.bf16.vlgmr.msra.gmra.mxu0 %v3772_v53  ;;  %v3775_v26 = vld [vmem:[#allocation2 + $0x1d0] ss:$36 sps:$4 sm:$0xff]  }
  0xd1   : > { %3514 = vmatprep.mubr.bf16.mxu0 %v3774_v46  ;;  %v3776_v39 = vld [vmem:[#allocation2 + $0xf8] ss:$36 sps:$4 sm:$0xff]  }
  0xd3   : > { %v3777_v14 = vld [vmem:[#allocation2 + $0x218] ss:$36 sps:$4 sm:$0xff]  }
  0xd5   : > { %3519 = vmatmul.mubr.bf16.vlgmr.msra.gmra.mxu1 %v3773_v7 }
  0xd6   : > { %3522 = vmatprep.mubr.bf16.mxu1 %v3775_v26 }
  0xd8   : > { %3515 = vmatmul.mubr.bf16.gmra.mxu0 %v3776_v39 }
  0xdd   : > { %3523 = vmatmul.mubr.bf16.gmra.mxu1 %v3777_v14 }
  0xf8   : > { %v3238_v20 = vpop.f32.mrf.mxu0 }
  0xf9   : > { %v3302_v40 = vpop.f32.mrf.mxu1 }
  0xfa   : > { %v3239_v56 = vpop.f32.mrf.mxu0 }
  0xfb   : > { %v3303_v18 = vpop.f32.mrf.mxu1  ;;  %v3240_v23 = vadd.f32 %v3239_v56, %v3238_v20 }
  0xfc   : > { %v3304_v44 = vadd.f32 %v3303_v18, %v3302_v40  ;;  %v3241_v34 = vpop.f32.mrf.mxu0 }
  0xfd   : > { %v3305_v21 = vpop.f32.mrf.mxu1 }
  0xfe   : > { %v4770_v35 = vadd.f32 %v3304_v44, %v3240_v23  ;;  %v3242_v38 = vpop.f32.mrf.mxu0 }
  0xff   : > { %v3306_v25 = vpop.f32.mrf.mxu1  ;;  %v3243_v47 = vadd.f32 %v3242_v38, %v3241_v34 }
 0x100   : > { %v3307_v30 = vadd.f32 %v3306_v25, %v3305_v21 }
 0x101   : > { %v3308_v45 = vpop.f32.mrf.mxu1 }
 0x102   : > { %v4772_v50 = vadd.f32 %v3307_v30, %v3243_v47 }
 0x103   : > { %v3309_v48 = vpop.f32.mrf.mxu1 }
 0x104   : > { %v3244_v12 = vpop.f32.mrf.mxu0  ;;  %v3310_v22 = vadd.f32 %v3309_v48, %v3308_v45 }
 0x105   : > { %v3311_v63 = vpop.f32.mrf.mxu1 }
 0x106   : > { %v3245_v27 = vpop.f32.mrf.mxu0 }
 0x107   : > { %v3246_v32 = vadd.f32 %v3245_v27, %v3244_v12  ;;  %v3312_v33 = vpop.f32.mrf.mxu1 }
 0x108   : > { %v3247_v10 = vpop.f32.mrf.mxu0  ;;  %v3313_v17 = vadd.f32 %v3312_v33, %v3311_v63 }
 0x109   : > { %v4774_v51 = vadd.f32 %v3310_v22, %v3246_v32  ;;  %v3314_v19 = vpop.f32.mrf.mxu1 }
 0x10a   : > { %v3248_v52 = vpop.f32.mrf.mxu0 }
 0x10b   : > { %v3249_v13 = vadd.f32 %v3248_v52, %v3247_v10  ;;  %v3315_v60 = vpop.f32.mrf.mxu1 }
 0x10c   : > { %v3250_v24 = vpop.f32.mrf.mxu0  ;;  %v3316_v43 = vadd.f32 %v3315_v60, %v3314_v19 }
 0x10d   : > { %v4776_v59 = vadd.f32 %v3313_v17, %v3249_v13  ;;  %v3317_v58 = vpop.f32.mrf.mxu1 }
 0x10e   : > { %v3251_v61 = vpop.f32.mrf.mxu0 }
 0x10f   : > { %v3252_v37 = vadd.f32 %v3251_v61, %v3250_v24  ;;  %v3318_v54 = vpop.f32.mrf.mxu1 }
 0x110   : > { %v3253_v16 = vpop.f32.mrf.mxu0  ;;  %v3319_v15 = vadd.f32 %v3318_v54, %v3317_v58 }
 0x111   : > { %v4778_v0 = vadd.f32 %v3316_v43, %v3252_v37  ;;  %v3320_v49 = vpop.f32.mrf.mxu1 }
 0x112   : > { %v3254_v36 = vpop.f32.mrf.mxu0 }
 0x113   : > { %v3255_v62 = vadd.f32 %v3254_v36, %v3253_v16  ;;  %v3321_v55 = vpop.f32.mrf.mxu1 }
 0x114   : > { %v3256_v31 = vpop.f32.mrf.mxu0  ;;  %v3322_v2 = vadd.f32 %v3321_v55, %v3320_v49 }
 0x115   : > { %v4780_v11 = vadd.f32 %v3319_v15, %v3255_v62  ;;  %v3323_v9 = vpop.f32.mrf.mxu1 }
 0x116   : > { %v3257_v42 = vpop.f32.mrf.mxu0 }
 0x117   : > { %v3258_v6 = vadd.f32 %v3257_v42, %v3256_v31  ;;  %v3324_v57 = vpop.f32.mrf.mxu1 }
 0x118   : > { %v3259_v29 = vpop.f32.mrf.mxu0  ;;  %v3325_v1 = vadd.f32 %v3324_v57, %v3323_v9 }
 0x119   : > { %v4782_v8 = vadd.f32 %v3322_v2, %v3258_v6  ;;  %v3326_v4 = vpop.f32.mrf.mxu1 }
 0x11a   : > { %v3260_v3 = vpop.f32.mrf.mxu0 }
 0x11b   : > { %v3261_v28 = vadd.f32 %v3260_v3, %v3259_v29  ;;  %v3327_v53 = vpop.f32.mrf.mxu1 }
 0x11c   : > { %v3328_v46 = vadd.f32 %v3327_v53, %v3326_v4 }
 0x11d   : > { %v4784_v5 = vadd.f32 %v3325_v1, %v3261_v28  ;;  %v3329_v26 = vpop.f32.mrf.mxu1 }
 0x11e   : > { %v3262_v41 = vpop.f32.mrf.mxu0 }
 0x11f   : > { %v3330_v40 = vpop.f32.mrf.mxu1 }
 0x120   : > { %v3263_v7 = vpop.f32.mrf.mxu0  ;;  %v3331_v20 = vadd.f32 %v3330_v40, %v3329_v26 }
 0x121   : > { %v3264_v39 = vadd.f32 %v3263_v7, %v3262_v41 }
 0x122   : > { %v3265_v14 = vpop.f32.mrf.mxu0 }
 0x123   : > { %v4786_v18 = vadd.f32 %v3328_v46, %v3264_v39  ;;  %v3332_v56 = vpop.f32.mrf.mxu1 }
 0x124   : > { %v3266_v44 = vpop.f32.mrf.mxu0 }
 0x125   : > { %v3267_v21 = vadd.f32 %v3266_v44, %v3265_v14  ;;  %v3333_v25 = vpop.f32.mrf.mxu1 }
 0x126   : > { %v3334_v30 = vadd.f32 %v3333_v25, %v3332_v56 }
 0x127   : > { %v4788_v23 = vadd.f32 %v3331_v20, %v3267_v21  ;;  %v3335_v38 = vpop.f32.mrf.mxu1 }
 0x128   : > { %v3268_v34 = vpop.f32.mrf.mxu0 }
 0x129   : > { %5007 = vst [vmem:[#allocation6_spill] sm:$0xff] %v4788_v23  ;;  %v3336_v48 = vpop.f32.mrf.mxu1 }
 0x12a   : > { %v3269_v45 = vpop.f32.mrf.mxu0  ;;  %v3337_v22 = vadd.f32 %v3336_v48, %v3335_v38 }
 0x12b   : > { %v3270_v47 = vadd.f32 %v3269_v45, %v3268_v34  ;;  %v3338_v32 = vpop.f32.mrf.mxu1 }
 0x12c   : > { %v3271_v12 = vpop.f32.mrf.mxu0 }
 0x12d   : > { %v4790_v63 = vadd.f32 %v3334_v30, %v3270_v47  ;;  %v3339_v10 = vpop.f32.mrf.mxu1 }
 0x12e   : > { %v3272_v27 = vpop.f32.mrf.mxu0  ;;  %v3340_v13 = vadd.f32 %v3339_v10, %v3338_v32 }
 0x12f   : > { %v3273_v33 = vadd.f32 %v3272_v27, %v3271_v12  ;;  %v3341_v19 = vpop.f32.mrf.mxu1 }
 0x131   : > { %v4792_v17 = vadd.f32 %v3337_v22, %v3273_v33  ;;  %v3274_v52 = vpop.f32.mrf.mxu0  ;;  %v3342_v43 = vpop.f32.mrf.mxu1 }
 0x132   : > { %v3343_v58 = vadd.f32 %v3342_v43, %v3341_v19 }
 0x133   : > { %v3275_v24 = vpop.f32.mrf.mxu0 }
 0x134   : > { %v3276_v60 = vadd.f32 %v3275_v24, %v3274_v52 }
 0x135   : > { %v3277_v61 = vpop.f32.mrf.mxu0  ;;  %v3344_v15 = vpop.f32.mrf.mxu1 }
 0x136   : > { %v4794_v37 = vadd.f32 %v3340_v13, %v3276_v60 }
 0x137   : > { %v3278_v16 = vpop.f32.mrf.mxu0  ;;  %v3345_v49 = vpop.f32.mrf.mxu1 }
 0x138   : > { %5008 = vst [vmem:[#allocation7_spill] sm:$0xff] %v4794_v37  ;;  %v3279_v54 = vadd.f32 %v3278_v16, %v3277_v61  ;;  %v3346_v55 = vadd.f32 %v3345_v49, %v3344_v15 }
 0x139   : > { %v3347_v2 = vpop.f32.mrf.mxu1 }
 0x13a   : > { %v4796_v36 = vadd.f32 %v3343_v58, %v3279_v54  ;;  %v3280_v62 = vpop.f32.mrf.mxu0 }
 0x13b   : > { %v3348_v6 = vpop.f32.mrf.mxu1 }
 0x13c   : > { %5009 = vst [vmem:[#allocation8_spill] sm:$0xff] %v4796_v36  ;;  %v3281_v31 = vpop.f32.mrf.mxu0  ;;  %v3349_v29 = vadd.f32 %v3348_v6, %v3347_v2 }
 0x13d   : > { %v3282_v9 = vadd.f32 %v3281_v31, %v3280_v62 }
 0x13e   : > { %v3283_v42 = vpop.f32.mrf.mxu0 }
 0x13f   : > { %v4798_v57 = vadd.f32 %v3346_v55, %v3282_v9 }
 0x140   : > { %v3284_v1 = vpop.f32.mrf.mxu0 }
 0x141   : > { %5010 = vst [vmem:[#allocation9_spill] sm:$0xff] %v4798_v57  ;;  %v3285_v3 = vadd.f32 %v3284_v1, %v3283_v42 }
 0x142   : > { %v3366_v28 = vpop.f32.mrf.mxu0 }
 0x143   : > { %v4800_v4 = vadd.f32 %v3349_v29, %v3285_v3 }
 0x144   : > { %v3367_v41 = vpop.f32.mrf.mxu0  ;;  %v4802_v53 = vpop.f32.mrf.mxu1 }
 0x145   : > { %5011 = vst [vmem:[#allocation10_spill] sm:$0xff] %v4800_v4 }
 0x146   : > { %v3369_v46 = vpop.f32.mrf.mxu0  ;;  %v4804_v7 = vpop.f32.mrf.mxu1 }
 0x148   : > { %v3370_v26 = vpop.f32.mrf.mxu0  ;;  %v4806_v39 = vpop.f32.mrf.mxu1 }
 0x14a   : > { %v3372_v14 = vpop.f32.mrf.mxu0  ;;  %v4808_v40 = vpop.f32.mrf.mxu1 }
 0x14c   : > { %v3373_v20 = vpop.f32.mrf.mxu0  ;;  %v3436_v44 = vpop.f32.mrf.mxu1 }
 0x14e   : > { %v3375_v21 = vpop.f32.mrf.mxu0  ;;  %v3437_v56 = vpop.f32.mrf.mxu1 }
 0x150   : > { %v3376_v25 = vpop.f32.mrf.mxu0  ;;  %v4810_v34 = vpop.f32.mrf.mxu1 }
 0x152   : > { %v4812_v38 = vpop.f32.mrf.mxu1 }
 0x154   : > { %v3378_v30 = vpop.f32.mrf.mxu0 }
 0x156   : > { %v3379_v45 = vpop.f32.mrf.mxu0 }
 0x158   : > { %v3381_v47 = vpop.f32.mrf.mxu0 }
 0x159   : > { %v4814_v48 = vpop.f32.mrf.mxu1 }
 0x15a   : > { %v3382_v12 = vpop.f32.mrf.mxu0 }
 0x15b   : > { %v4816_v22 = vpop.f32.mrf.mxu1 }
 0x15d   : > { %v3384_v27 = vpop.f32.mrf.mxu0  ;;  %v4818_v32 = vpop.f32.mrf.mxu1 }
 0x15e   : > { %5012 = vst [vmem:[#allocation11_spill] sm:$0xff] %v4818_v32 }
 0x15f   : > { %v3385_v33 = vpop.f32.mrf.mxu0  ;;  %v4820_v10 = vpop.f32.mrf.mxu1 }
 0x160   : > { %5013 = vst [vmem:[#allocation12_spill] sm:$0xff] %v4820_v10 }
 0x161   : > { %v4822_v52 = vpop.f32.mrf.mxu0 }
 0x162   : > { %v4824_v13 = vpop.f32.mrf.mxu1 }
 0x163   : > { %v3388_v19 = vpop.f32.mrf.mxu0 }
 0x164   : > { %v4826_v24 = vpop.f32.mrf.mxu1 }
 0x166   : > { %v4828_v60 = vpop.f32.mrf.mxu1 }
 0x167   : > { %5014 = vst [vmem:[#allocation13_spill] sm:$0xff] %v4828_v60  ;;  %v3390_v43 = vpop.f32.mrf.mxu0 }
 0x168   : > { %v4830_v58 = vpop.f32.mrf.mxu1 }
 0x169   : > { %v3391_v61 = vpop.f32.mrf.mxu0  ;;  %5015 = vst [vmem:[#allocation14_spill] sm:$0xff] %v4830_v58 }
 0x16b   : > { %v3393_v16 = vpop.f32.mrf.mxu0 }
 0x16d   : > { %v3394_v15 = vpop.f32.mrf.mxu0 }
 0x16e   : > { %v4832_v54 = vpop.f32.mrf.mxu1 }
 0x170   : > { %v4834_v62 = vpop.f32.mrf.mxu1 }
 0x172   : > { %v4836_v49 = vpop.f32.mrf.mxu1 }
 0x173   : > { %5016 = vst [vmem:[#allocation15_spill] sm:$0xff] %v4836_v49  ;;  %v3396_v55 = vpop.f32.mrf.mxu0  ;;  %v3368_v49 = vadd.f32 %v3367_v41, %v3366_v28  ;;  %v3432_v28 = vadd.f32 %v4804_v7, %v4802_v53  ;;  %v3380_v41 = vadd.f32 %v3379_v45, %v3378_v30  ;;  %v3441_v53 = vadd.f32 %v4812_v38, %v4810_v34 }
 0x174   : > { %v4838_v2 = vpop.f32.mrf.mxu1  ;;  %v3450_v34 = vadd.f32 %v4826_v24, %v4824_v13 }
 0x175   : > { %v3397_v31 = vpop.f32.mrf.mxu0  ;;  %5017 = vst [vmem:[#allocation16_spill] sm:$0xff] %v4838_v2  ;;  %v3374_v2 = vadd.f32 %v3373_v20, %v3372_v14 }
 0x176   : > { %v3398_v14 = vadd.f32 %v3397_v31, %v3396_v55 }
 0x177   : > { %v3399_v9 = vpop.f32.mrf.mxu0 }
 0x178   : > { %v2627_v7 = vadd.f32 %v3398_v14, %v4790_v63 }
 0x179   : > { %v3460_v42 = vpop.f32.mrf.mxu1  ;;  %v3400_v6 = vpop.f32.mrf.mxu0 }
 0x17b   : > { %v3461_v29 = vpop.f32.mrf.mxu1 }
 0x17d   : > { %v4840_v1 = vpop.f32.mrf.mxu1 }
 0x17e   : > { %5018 = vst [vmem:[#allocation17_spill] sm:$0xff] %v4840_v1  ;;  %v4842_v3 = vpop.f32.mrf.mxu0  ;;  %v3371_v1 = vadd.f32 %v3370_v26, %v3369_v46  ;;  %v3386_v46 = vadd.f32 %v3385_v33, %v3384_v27  ;;  %v2603_v27 = vadd.f32 %v3380_v41, %v4778_v0  ;;  %v3444_v0 = vadd.f32 %v4816_v22, %v4814_v48  ;;  %v5026_v48 = vld [vmem:[#allocation6_spill] sm:$0xff] }
 0x17f   : > { %5019 = vst [vmem:[#allocation18_spill] sm:$0xff] %v4842_v3  ;;  %v4844_v36 = vpop.f32.mrf.mxu1  ;;  %v3456_v33 = vadd.f32 %v4834_v62, %v4832_v54  ;;  %v5031_v62 = vld [vmem:[#allocation13_spill] sm:$0xff] }
 0x180   : > { %5020 = vst [vmem:[#allocation19_spill] sm:$0xff] %v4844_v36  ;;  %v4846_v4 = vpop.f32.mrf.mxu0  ;;  %v2700_v41 = vadd.f32 %v3444_v0, %v2603_v27 }
 0x181   : > { %5021 = vst [vmem:[#allocation20_spill] sm:$0xff] %v4846_v4  ;;  %v2595_v4 = vadd.f32 %v3374_v2, %v4774_v51  ;;  %v3435_v51 = vadd.f32 %v4808_v40, %v4806_v39  ;;  %v2611_v39 = vadd.f32 %v3386_v46, %v4782_v8  ;;  %v5035_v46 = vld [vmem:[#allocation9_spill] sm:$0xff] }
 0x182   : > { %v4848_v37 = vpop.f32.mrf.mxu0 }
 0x183   : > { %5022 = vst [vmem:[#allocation21_spill] sm:$0xff] %v4848_v37  ;;  %v3377_v37 = vadd.f32 %v3376_v25, %v3375_v21  ;;  %v3392_v21 = vadd.f32 %v3391_v61, %v3390_v43  ;;  %v2708_v24 = vadd.f32 %v3450_v34, %v2611_v39 }
 0x184   : > { %v4850_v10 = vpop.f32.mrf.mxu1  ;;  %v4852_v32 = vpop.f32.mrf.mxu0 }
 0x185   : > { %5023 = vst [vmem:[#allocation22_spill] sm:$0xff] %v4850_v10  ;;  %5024 = vst [vmem:[#allocation23_spill] sm:$0xff] %v4852_v32  ;;  %v2587_v10 = vadd.f32 %v3368_v49, %v4770_v35  ;;  %v3438_v32 = vadd.f32 %v3437_v56, %v3436_v44  ;;  %v2598_v35 = vadd.f32 %v3377_v37, %v4776_v59 }
 0x186   : > { %v4854_v57 = vpop.f32.mrf.mxu1  ;;  %v3401_v44 = vadd.f32 %v3400_v6, %v3399_v9  ;;  %v3389_v59 = vadd.f32 %v3388_v19, %v4822_v52  ;;  %v3395_v37 = vadd.f32 %v3394_v15, %v3393_v16  ;;  %v5029_v15 = vld [vmem:[#allocation18_spill] sm:$0xff]  ;;  %v5034_v6 = vld [vmem:[#allocation16_spill] sm:$0xff] }
 0x187   : > { %5025 = vst [vmem:[#allocation24_spill] sm:$0xff] %v4854_v57  ;;  %v2590_v57 = vadd.f32 %v3371_v1, %v4772_v50  ;;  %v2692_v25 = vadd.f32 %v3438_v32, %v2595_v4  ;;  %v3383_v50 = vadd.f32 %v3382_v12, %v3381_v47  ;;  %v2684_v55 = vadd.f32 %v3432_v28, %v2587_v10  ;;  %v5028_v61 = vld [vmem:[#allocation19_spill] sm:$0xff]  ;;  %v5032_v9 = vld [vmem:[#allocation14_spill] sm:$0xff] }
 0x188   : > { %v4856_v58 = vpop.f32.mrf.mxu1  ;;  %v3408_v60 = vpop.f32.mrf.mxu0  ;;  %v2619_v47 = vadd.f32 %v3392_v21, %v4786_v18  ;;  %v3462_v12 = vadd.f32 %v3461_v29, %v3460_v42  ;;  %v2630_v38 = vadd.f32 %v3401_v44, %v4792_v17  ;;  %v2614_v43 = vadd.f32 %v3389_v59, %v4784_v5  ;;  %v5030_v31 = vld [vmem:[#allocation20_spill] sm:$0xff]  ;;  %v5033_v42 = vld [vmem:[#allocation15_spill] sm:$0xff] }
 0x189   : > { %v2687_v45 = vadd.f32 %v3435_v51, %v2590_v57  ;;  %v2695_v57 = vadd.f32 %v3441_v53, %v2598_v35  ;;  %v2606_v8 = vadd.f32 %v3383_v50, %v4780_v11  ;;  %v2622_v22 = vadd.f32 %v3395_v37, %v5026_v48  ;;  %v5027_v11 = vld [vmem:[#allocation17_spill] sm:$0xff]  ;;  %v5036_v50 = vld [vmem:[#allocation11_spill] sm:$0xff]  ;;  %v5037_v44 = vld [vmem:[#allocation12_spill] sm:$0xff] }
 0x18a   : > { %v4858_v3 = vpop.f32.mrf.mxu1  ;;  %v3409_v36 = vpop.f32.mrf.mxu0  ;;  %v2724_v52 = vadd.f32 %v3462_v12, %v2627_v7  ;;  %v3465_v16 = vadd.f32 %v5028_v61, %v5027_v11  ;;  %v3404_v2 = vadd.f32 %v5030_v31, %v5029_v15  ;;  %v3453_v5 = vadd.f32 %v5032_v9, %v5031_v62  ;;  %v5040_v59 = vld [vmem:[#allocation7_spill] sm:$0xff] }
 0x18b   : > { %v3410_v10 = vadd.f32 %v3409_v36, %v3408_v60  ;;  %v2716_v36 = vadd.f32 %v3456_v33, %v2619_v47  ;;  %v3459_v29 = vadd.f32 %v5034_v6, %v5033_v42 }
 0x18c   : > { %v4863_v23 = vpop.f32.mrf.mxu0  ;;  %v2727_v14 = vadd.f32 %v3465_v16, %v2630_v38  ;;  %v5039_v53 = vld [vmem:[#allocation23_spill] sm:$0xff]  ;;  %v2711_v39 = vadd.f32 %v3453_v5, %v2614_v43  ;;  %v2635_v37 = vadd.f32 %v3404_v2, %v5040_v59  ;;  %v5041_v47 = vld [vmem:[#allocation22_spill] sm:$0xff]  ;;  %v3471_v16 = vadd.f32 %v4858_v3, %v4856_v58 }
 0x18d   : > { %v4870_v26 = vpop.f32.mrf.mxu1  ;;  %v2643_v51 = vadd.f32 %v3410_v10, %v5035_v46  ;;  %v5043_v38 = vld [vmem:[#allocation10_spill] sm:$0xff]  ;;  %v5044_v10 = vld [vmem:[#allocation8_spill] sm:$0xff] }
 0x18e   : > { %v3412_v20 = vpop.f32.mrf.mxu0  ;;  %v5042_v12 = vld [vmem:[#allocation24_spill] sm:$0xff] }
 0x18f   : > { %v3473_v56 = vpop.f32.mrf.mxu1  ;;  %v3413_v35 = vadd.f32 %v3412_v20, %v4863_v23 }
 0x190   : > { %v3512_v49 = vpop.f32.mrf.mxu0  ;;  %v3474_v23 = vadd.f32 %v3473_v56, %v4870_v26 }
 0x191   : > { %v2789_v30 = vadd.f32 %v3512_v49, %v2692_v25  ;;  %v4881_v4 = vpop.f32.mrf.mxu1  ;;  %v3447_v49 = vadd.f32 %v5037_v44, %v5036_v50 }
 0x192   : > { %v2780_v40 = vpop.f32.mrf.mxu0  ;;  %v2740_v26 = vadd.f32 %v3474_v23, %v2643_v51 }
 0x193   : > { %2845 = vst [vmem:[%s4884_s17 + $0x10] sm:$0xff] %v2789_v30  ;;  %v2781_v63 = vadd.f32 %v2780_v40, %v2684_v55  ;;  %v3476_v32 = vpop.f32.mrf.mxu1  ;;  %v5038_v55 = vld [vmem:[#allocation21_spill] sm:$0xff]  ;;  %v2703_v34 = vadd.f32 %v3447_v49, %v2606_v8 }
 0x194   : > { %v3513_v18 = vpop.f32.mrf.mxu0  ;;  %v3407_v7 = vadd.f32 %v5039_v53, %v5038_v55  ;;  %v3477_v48 = vadd.f32 %v3476_v32, %v4881_v4 }
 0x195   : > { %2843 = vst [vmem:[%s4884_s17] sm:$0xff] %v2781_v63  ;;  %v2792_v19 = vadd.f32 %v3513_v18, %v2695_v57  ;;  %v3520_v13 = vpop.f32.mrf.mxu1  ;;  %v3468_v63 = vadd.f32 %v5042_v12, %v5041_v47  ;;  %v2646_v18 = vadd.f32 %v3413_v35, %v5043_v38 }
 0x196   : > { %v2783_v17 = vpop.f32.mrf.mxu0  ;;  %v2821_v54 = vadd.f32 %v3520_v13, %v2724_v52  ;;  %v2638_v52 = vadd.f32 %v3407_v7, %v5044_v10 }
 0x197   : > { %2846 = vst [vmem:[%s4884_s17 + $0x18] sm:$0xff] %v2792_v19  ;;  %v2784_v60 = vadd.f32 %v2783_v17, %v2687_v45  ;;  %v2812_v1 = vpop.f32.mrf.mxu1  ;;  %v2719_v45 = vadd.f32 %v3459_v29, %v2622_v22  ;;  %v2732_v22 = vadd.f32 %v3468_v63, %v2635_v37  ;;  %v2743_v17 = vadd.f32 %v3477_v48, %v2646_v18 }
 0x198   : > { %v3516_v28 = vpop.f32.mrf.mxu0  ;;  %2853 = vst [vmem:[%s4884_s17 + $0x50] sm:$0xff] %v2821_v54  ;;  %v2813_v21 = vadd.f32 %v2812_v1, %v2716_v36 }
 0x199   : > { %2844 = vst [vmem:[%s4884_s17 + $0x8] sm:$0xff] %v2784_v60  ;;  %v2805_v25 = vadd.f32 %v3516_v28, %v2708_v24  ;;  %v3521_v30 = vpop.f32.mrf.mxu1  ;;  %v2735_v24 = vadd.f32 %v3471_v16, %v2638_v52 }
 0x19a   : > { %v2796_v27 = vpop.f32.mrf.mxu0  ;;  %2851 = vst [vmem:[%s4884_s17 + $0x40] sm:$0xff] %v2813_v21  ;;  %v2824_v20 = vadd.f32 %v3521_v30, %v2727_v14 }
 0x19b   : > { %2849 = vst [vmem:[%s4884_s17 + $0x30] sm:$0xff] %v2805_v25  ;;  %v2797_v40 = vadd.f32 %v2796_v27, %v2700_v41  ;;  %v2815_v57 = vpop.f32.mrf.mxu1 }
 0x19c   : > { %v3517_v0 = vpop.f32.mrf.mxu0  ;;  %2854 = vst [vmem:[%s4884_s17 + $0x58] sm:$0xff] %v2824_v20  ;;  %v2816_v33 = vadd.f32 %v2815_v57, %v2719_v45 }
 0x19d   : > { %2847 = vst [vmem:[%s4884_s17 + $0x20] sm:$0xff] %v2797_v40  ;;  %v2808_v56 = vadd.f32 %v3517_v0, %v2711_v39  ;;  %v3524_v19 = vpop.f32.mrf.mxu1 }
 0x19e   : > { %v2799_v43 = vpop.f32.mrf.mxu0  ;;  %2852 = vst [vmem:[%s4884_s17 + $0x48] sm:$0xff] %v2816_v33  ;;  %v2837_v8 = vadd.f32 %v3524_v19, %v2740_v26 }
 0x19f   : > { %2850 = vst [vmem:[%s4884_s17 + $0x38] sm:$0xff] %v2808_v56  ;;  %v2800_v11 = vadd.f32 %v2799_v43, %v2703_v34  ;;  %v2828_v61 = vpop.f32.mrf.mxu1 }
 0x1a0   : > { %2857 = vst [vmem:[%s4884_s17 + $0x70] sm:$0xff] %v2837_v8  ;;  %v2829_v13 = vadd.f32 %v2828_v61, %v2732_v22 }
 0x1a1   : > { %2848 = vst [vmem:[%s4884_s17 + $0x28] sm:$0xff] %v2800_v11  ;;  %v3525_v4 = vpop.f32.mrf.mxu1 }
 0x1a2   : > { %2855 = vst [vmem:[%s4884_s17 + $0x60] sm:$0xff] %v2829_v13  ;;  %v2840_v32 = vadd.f32 %v3525_v4, %v2743_v17 }
 0x1a3   : > { %v2831_v15 = vpop.f32.mrf.mxu1 }
 0x1a4   : > { %2858 = vst [vmem:[%s4884_s17 + $0x78] sm:$0xff] %v2840_v32  ;;  %v2832_v58 = vadd.f32 %v2831_v15, %v2735_v24 }
 0x1a6   : > { %2856 = vst [vmem:[%s4884_s17 + $0x68] sm:$0xff] %v2832_v58 }
 0x1a7   : > { %3791 = shalt.err (!%p3788_p6)
}
 0x1a8   : > { %s3792_s6 = scalar_lea.hbm %s4939_s26, 2048  ;;  %s3796_s17 = scalar_lea.hbm %s5000_s2, 8192 }
 0x1a9   : > { %p3793_p7 = scmp.ne.s32.totalorder %s4939_s26, %s3792_s6  ;;  %p3797_p11 = scmp.lt.s32.totalorder %s4939_s26, %s5000_s2 }
 0x1aa   : > { %p3798_p12 = scmp.lt.s32.totalorder %s3796_s17, %s3792_s6 }
 0x1ab   : > { %p3794_p9 = pnand %p3793_p7, %p3941_p3 }
 0x1ac   : > { %p3799_p13 = por %p3798_p12, %p3797_p11 }
 0x1ad   : > { %p3795_p10 = pneg %p3794_p9 }
 0x1af   : > { %p3800_p0 = pnand %p3799_p13, %p3795_p10 }
 0x1b1   : > { %3803 = shalt.err (!%p3800_p0)
}
 0x1b2   : > { %s3873_s12 = smov 128   ;;  %s3874_s13 = smov 8  }
 0x1b3   : > { %3543 = dma.vmem_to_hbm [thread:$0]  (%p3941_p3), %s4941_s18, 2048, %s4939_s26, %s4947_s28, %s3873_s12, %s3873_s12, %s3874_s13  }
 0x1b4 PF: > { %p3549_p1 = scmp.ge.s32.totalorder %s3870_s16, 2  ;;  %s2892_s8 = sand.u32 1, %s3842_s9  }
 0x1b5   : > { %s2893_s25 = scalar_lea.sflag [#allocation4], %s2892_s8 }
 0x1b6   : > { %p3546_p2 = pnand %p3549_p1, %p3950_p8 }
 0x1b8   : > { %p3547_p4 = pneg %p3546_p2 }
 0x1ba   : > { %3837 = dma.done.wait (%p3547_p4), %s2893_s25, 2048  }
 0x1bb   : > { %3839 = vsyncadd (%p3547_p4), %s2893_s25, 4294965248  ;;  %s15_s16 = sadd.s32 1, %s3870_s16   ;;  %s5045_s9 = smov %s3846_s10 }
 0x1bc   : > { %p12_p5 = scmp.ge.s32.totalorder %s15_s16, 6   ;;  %s5046_s10 = smov %s3850_s11 }
 0x1bd   : > { %s5047_s11 = smov %s3959_s27  ;;  %s5048_s12 = smov %s3862_s14 }
 0x1be   : > { %s5049_s13 = smov %s3866_s15  ;;  %s5050_s14 = smov %s5053_s19 }
 0x1bf   : > { %s5051_s15 = smov %s5057_s20  ;;  %14 = sbr.rel (!%p12_p5) target bundleno = 5 (0x5), region = 73 }
 0x1c4   :  { %2898 = vsyncpa [#allocation4], 1 }
 0x1c5   :  { %2900 = vsyncpa [#allocation4 + $0x1], 1 }

</bundles_post_ra>
